<compile_context>
chip_gen: v5e
topology: v5e:2x2
jax: 0.10.0
libtpu: 0.0.40
codegen_flags: <defaults>
</compile_context>

<pallas_src>
import functools

import jax
import jax.numpy as jnp
import numpy as np
from jax import lax
from jax.experimental import pallas as pl
from jax.experimental.pallas import tpu as pltpu

KSIZE = 7
PAD = 3


def cbam_kernel(x_ref, w1_ref, w2t_ref, cmask_ref, ws_ref, o_ref,
                pad_a_ref, pad_m_ref, *, W):
    # x_ref     : (Bt, C, HW)   flattened spatial axis (lane-dense)
    # w1_ref    : (Chid, C)     fc1 weight (rows are lane-dense)
    # w2t_ref   : (Chid, C)     fc2 weight, transposed (rows are lane-dense)
    # cmask_ref : (KSIZE, HW)   f32 column-validity masks, one row per dj
    # ws_ref    : (2*KSIZE*KSIZE,) SMEM spatial-conv taps, flattened [in_ch, kh, kw]
    # pad_a/m   : (Bt, HW + 2*pad_each) persistent VMEM scratch: zero-padded
    #             avg / max spatial maps; conv taps are read straight from VMEM.
    Bt, C, HW = x_ref.shape
    Chid = w1_ref.shape[0]
    pad_each = (pad_a_ref.shape[-1] - HW) // 2

    # ---------------- Phase 1: channel attention ----------------
    x = x_ref[...]                                          # bulk math in input dtype
    avg_p = jnp.mean(x, axis=-1, dtype=jnp.float32)         # (Bt, C)  lane reduce
    max_p = jnp.max(x, axis=-1).astype(jnp.float32)         # (Bt, C)
    pooled = jnp.concatenate([avg_p, max_p], axis=0)        # (2*Bt, C) stacked [avg; max]

    # Shared MLP on the VPU: Chid = C // ratio is tiny, so an MXU dot would
    # waste >98% of the systolic array and pay fill/drain latency twice.
    y = None
    for j in range(Chid):
        w1j = w1_ref[j:j + 1, :].astype(jnp.float32)                  # (1, C)
        hj = jnp.maximum(
            jnp.sum(pooled * w1j, axis=-1, keepdims=True), 0.0)       # (2*Bt, 1)
        term = hj * w2t_ref[j:j + 1, :].astype(jnp.float32)           # (2*Bt, C)
        y = term if y is None else y + term
    ca = jax.nn.sigmoid(y[:Bt] + y[Bt:])                              # (Bt, C)

    # Gate and store immediately so the raw input slab dies before the spatial
    # phase (bounds vreg live ranges / vst pressure, esp. v5e's single vst slot).
    gated = x * ca.astype(x.dtype)[:, :, None]                        # (Bt, C, HW)
    o_ref[...] = gated.astype(o_ref.dtype)

    # ---------------- Phase 2: spatial attention ----------------
    avg_s = jnp.mean(gated, axis=1, dtype=jnp.float32)                # (Bt, HW)
    max_s = jnp.max(gated, axis=1).astype(jnp.float32)                # (Bt, HW)
    # `x` / `gated` are dead from here; only (Bt, HW)-sized values stay live.
    # TODO(synk): if bundle profiling shows XLU saturation on v6e/v7x, move the
    # two mean-poolings onto the MXU (matmul with a ones vector).

    # Fill the persistent padded-map scratch: zero the pad lanes, then the maps.
    zpad = jnp.zeros((Bt, pad_each), jnp.float32)
    pad_a_ref[:, 0:pad_each] = zpad
    pad_a_ref[:, pad_each + HW:pad_each + HW + pad_each] = zpad
    pad_m_ref[:, 0:pad_each] = zpad
    pad_m_ref[:, pad_each + HW:pad_each + HW + pad_each] = zpad
    pad_a_ref[:, pad_each:pad_each + HW] = avg_s
    pad_m_ref[:, pad_each:pad_each + HW] = max_s

    # 7x7 conv in the flattened lane domain: tap (di, dj) is a static lane
    # offset di*W + dj read from VMEM; rows outside the image hit the zero pad
    # and cross-row column wrap is killed by the per-dj mask (7 multiplies).
    acc = None
    for j in range(KSIZE):                        # dj loop
        dj = j - PAD
        part = None
        for i in range(KSIZE):                    # 49 static tap loads total
            di = i - PAD
            start = pad_each + di * W + dj
            sl_a = pad_a_ref[:, start:start + HW]                     # (Bt, HW)
            sl_m = pad_m_ref[:, start:start + HW]
            w_avg = ws_ref[0 * KSIZE * KSIZE + i * KSIZE + j]
            w_max = ws_ref[1 * KSIZE * KSIZE + i * KSIZE + j]
            contrib = w_avg * sl_a + w_max * sl_m
            part = contrib if part is None else part + contrib
        masked = part * cmask_ref[j:j + 1, :]                         # (Bt, HW)
        acc = masked if acc is None else acc + masked

    sa = jax.nn.sigmoid(acc)                                          # (Bt, HW)

    # Final gate: in-place read-modify-write of the output block.
    g = o_ref[...]
    o_ref[...] = (g * sa.astype(g.dtype)[:, None, :]).astype(o_ref.dtype)


@jax.jit
def cbam_pallas(x, w1, w2, ws_oihw):
    B, C, H, W = x.shape
    HW = H * W
    Chid = w1.shape[0]

    x2 = x.reshape(B, C, HW)                 # lane-dense spatial layout
    w2t = jnp.transpose(w2)                  # (Chid, C) lane-dense rows
    ws_flat = ws_oihw.reshape(-1)            # (2*49,) SMEM scalar taps

    # Static per-dj column-validity masks for the flattened 7x7 conv.
    col = np.arange(HW, dtype=np.int64) % W
    cmask = np.stack(
        [((col + (j - PAD) >= 0) & (col + (j - PAD) < W)).astype(np.float32)
         for j in range(KSIZE)], axis=0)                    # (KSIZE, HW)
    cmask = jnp.asarray(cmask)

    pad_each = ((PAD * W + PAD + 127) // 128) * 128         # lane-aligned zero pad

    # --- Generation-aware VMEM budget / batch-tile selection ----------------
    try:
        vmem_cap = int(pltpu.get_tpu_info().vmem_capacity_bytes)
    except Exception:
        vmem_cap = 64 * 1024 * 1024          # conservative fallback (v7x per-TC)
    itemsize = jnp.dtype(x.dtype).itemsize
    # Per batch element per step: input + output blocks (each double-buffered),
    # ~2 full-size f32 intermediates, plus the padded conv scratch buffers.
    per_b = (4 * itemsize + 8) * C * HW + 8 * (HW + 2 * pad_each) + 4096
    budget = min(vmem_cap // 2, 48 * 1024 * 1024)
    bt_cap = max(1, budget // per_b)
    # Keep >= 2 grid steps when possible: lets BlockSpec double-buffering
    # overlap HBM DMA with compute and keeps both v7x TensorCores busy.
    target_steps = 2
    bt_target = max(1, B // target_steps) if B >= target_steps else B
    Bt = int(min(bt_cap, bt_target, B))
    while B % Bt:
        Bt -= 1
    # TODO(synk): for B == 1 on v7x, add a second "parallel" grid axis (split C
    # or HW in the gating phase) so the second TensorCore is not idle.

    vmem_limit = int(max(32 * 1024 * 1024,
                         min(int(vmem_cap * 0.75), 100 * 1024 * 1024)))

    kernel = functools.partial(cbam_kernel, W=W)
    out = pl.pallas_call(
        kernel,
        out_shape=jax.ShapeDtypeStruct((B, C, HW), x.dtype),
        grid=(B // Bt,),
        in_specs=[
            pl.BlockSpec((Bt, C, HW), lambda b: (b, 0, 0)),
            pl.BlockSpec((Chid, C), lambda b: (0, 0)),
            pl.BlockSpec((Chid, C), lambda b: (0, 0)),
            pl.BlockSpec((KSIZE, HW), lambda b: (0, 0)),
            pl.BlockSpec(memory_space=pltpu.SMEM),
        ],
        out_specs=pl.BlockSpec((Bt, C, HW), lambda b: (b, 0, 0)),
        scratch_shapes=[
            pltpu.VMEM((Bt, HW + 2 * pad_each), jnp.float32),   # padded avg map
            pltpu.VMEM((Bt, HW + 2 * pad_each), jnp.float32),   # padded max map
        ],
        compiler_params=pltpu.CompilerParams(
            dimension_semantics=("parallel",),
            vmem_limit_bytes=vmem_limit),
    )(x2, w1, w2t, cmask, ws_flat)
    return out.reshape(B, C, H, W)


def cbam_reference(x, w1, w2, ws_oihw):
    # Pure-JAX reference mirroring the PyTorch forward.
    avg_p = x.mean(axis=(2, 3))                                    # (B, C)
    max_p = x.max(axis=(2, 3))                                     # (B, C)

    def mlp(v):
        return jnp.maximum(v @ w1.T, 0.0) @ w2.T                   # (B, C)

    ca = jax.nn.sigmoid(mlp(avg_p) + mlp(max_p))                   # (B, C)
    out = x * ca[:, :, None, None]

    avg_s = out.mean(axis=1, keepdims=True)                        # (B, 1, H, W)
    max_s = out.max(axis=1, keepdims=True)                         # (B, 1, H, W)
    cat = jnp.concatenate([avg_s, max_s], axis=1)                  # (B, 2, H, W)
    sa_logit = lax.conv_general_dilated(
        cat, ws_oihw, window_strides=(1, 1),
        padding=((PAD, PAD), (PAD, PAD)),
        dimension_numbers=("NCHW", "OIHW", "NCHW"))
    sa = jax.nn.sigmoid(sa_logit)                                  # (B, 1, H, W)
    return out * sa


if __name__ == "__main__":
    # Small shapes consistent with CBAM(in_planes=32, ratio=16, kernel_size=7)
    B, C, H, W = 2, 32, 16, 16
    RATIO = 16
    Chid = C // RATIO                       # 2

    key = jax.random.PRNGKey(0)
    kx, k1, k2, k3 = jax.random.split(key, 4)
    x = jax.random.normal(kx, (B, C, H, W), dtype=jnp.float32)
    # fc1: Conv2d(C, C//r, 1, bias=False)  -> weight (C//r, C)
    w1 = jax.random.normal(k1, (Chid, C), dtype=jnp.float32) * 0.1
    # fc2: Conv2d(C//r, C, 1, bias=False)  -> weight (C, C//r)
    w2 = jax.random.normal(k2, (C, Chid), dtype=jnp.float32) * 0.1
    # SpatialAttention conv1: Conv2d(2, 1, 7, padding=3, bias=False) -> (1, 2, 7, 7)
    ws_oihw = jax.random.normal(k3, (1, 2, KSIZE, KSIZE), dtype=jnp.float32) * 0.1

    out = cbam_pallas(x, w1, w2, ws_oihw)
    jax.block_until_ready(out)

    ref = cbam_reference(x, w1, w2, ws_oihw)
    np.testing.assert_allclose(np.asarray(out), np.asarray(ref),
                               rtol=1e-4, atol=1e-4)
    print("KERNEL_OK")
</pallas_src>

<mosaic_0001>
module attributes {stable_mosaic.version = 11 : i64} {
  func.func @cbam_kernel(%arg0: i32, %arg1: memref<1x32x256xf32, #tpu.memory_space<vmem>>, %arg2: memref<2x32xf32, #tpu.memory_space<vmem>>, %arg3: memref<2x32xf32, #tpu.memory_space<vmem>>, %arg4: memref<7x256xf32, #tpu.memory_space<vmem>>, %arg5: memref<98xf32, #tpu.memory_space<smem>>, %arg6: memref<1x32x256xf32, #tpu.memory_space<vmem>>, %arg7: memref<1x512xf32, #tpu.memory_space<vmem>>, %arg8: memref<1x512xf32, #tpu.memory_space<vmem>>) attributes {dimension_semantics = [#tpu.dimension_semantics<parallel>], iteration_bounds = array<i64: 2>, scalar_prefetch = 0 : i64, scratch_operands = 2 : i64, tpu.core_type = #tpu.core_type<tc>, window_params = [{transform_indices = @transform_0, window_bounds = array<i64: 1, 32, 256>}, {pipeline_mode = #tpu.pipeline_mode<synchronous>, transform_indices = @transform_1, window_bounds = array<i64: 2, 32>}, {pipeline_mode = #tpu.pipeline_mode<synchronous>, transform_indices = @transform_2, window_bounds = array<i64: 2, 32>}, {pipeline_mode = #tpu.pipeline_mode<synchronous>, transform_indices = @transform_3, window_bounds = array<i64: 7, 256>}, {transform_indices = @transform_4, window_bounds = array<i64: 98>}, {transform_indices = @transform_5, window_bounds = array<i64: 1, 32, 256>}]} {
    %c0 = arith.constant 0 : index
    %c0_0 = arith.constant 0 : index
    %c0_1 = arith.constant 0 : index
    %0 = vector.load %arg1[%c0, %c0_0, %c0_1] : memref<1x32x256xf32, #tpu.memory_space<vmem>>, vector<1x32x256xf32>
    %cst = arith.constant dense<0.000000e+00> : vector<1x32xf32>
    %1 = vector.multi_reduction <add>, %0, %cst [2] : vector<1x32x256xf32> to vector<1x32xf32>
    %cst_2 = arith.constant 2.560000e+02 : f32
    %2 = vector.broadcast %cst_2 : f32 to vector<1x32xf32>
    %3 = arith.divf %1, %2 : vector<1x32xf32>
    %cst_3 = arith.constant dense<0xFF800000> : vector<1x32xf32>
    %4 = vector.multi_reduction <maximumf>, %0, %cst_3 [2] : vector<1x32x256xf32> to vector<1x32xf32>
    %5 = tpu.concatenate %3, %4 in 0 : vector<1x32xf32>, vector<1x32xf32> -> vector<2x32xf32>
    %c0_4 = arith.constant 0 : index
    %c0_5 = arith.constant 0 : index
    %6 = vector.load %arg2[%c0_4, %c0_5] : memref<2x32xf32, #tpu.memory_space<vmem>>, vector<1x32xf32>
    %7 = vector.broadcast %6 : vector<1x32xf32> to vector<2x32xf32>
    %8 = arith.mulf %5, %7 : vector<2x32xf32>
    %cst_6 = arith.constant dense<0.000000e+00> : vector<2xf32>
    %9 = vector.multi_reduction <add>, %8, %cst_6 [1] : vector<2x32xf32> to vector<2xf32>
    %10 = vector.shape_cast %9 : vector<2xf32> to vector<2x1xf32>
    %cst_7 = arith.constant 0.000000e+00 : f32
    %11 = vector.broadcast %cst_7 : f32 to vector<2x1xf32>
    %12 = arith.maximumf %10, %11 : vector<2x1xf32>
    %c0_8 = arith.constant 0 : index
    %c0_9 = arith.constant 0 : index
    %13 = vector.load %arg3[%c0_8, %c0_9] : memref<2x32xf32, #tpu.memory_space<vmem>>, vector<1x32xf32>
    %14 = vector.broadcast %12 : vector<2x1xf32> to vector<2x32xf32>
    %15 = vector.broadcast %13 : vector<1x32xf32> to vector<2x32xf32>
    %16 = arith.mulf %14, %15 : vector<2x32xf32>
    %c1 = arith.constant 1 : index
    %c0_10 = arith.constant 0 : index
    %17 = vector.load %arg2[%c1, %c0_10] : memref<2x32xf32, #tpu.memory_space<vmem>>, vector<1x32xf32>
    %18 = vector.broadcast %17 : vector<1x32xf32> to vector<2x32xf32>
    %19 = arith.mulf %5, %18 : vector<2x32xf32>
    %cst_11 = arith.constant dense<0.000000e+00> : vector<2xf32>
    %20 = vector.multi_reduction <add>, %19, %cst_11 [1] : vector<2x32xf32> to vector<2xf32>
    %21 = vector.shape_cast %20 : vector<2xf32> to vector<2x1xf32>
    %cst_12 = arith.constant 0.000000e+00 : f32
    %22 = vector.broadcast %cst_12 : f32 to vector<2x1xf32>
    %23 = arith.maximumf %21, %22 : vector<2x1xf32>
    %c1_13 = arith.constant 1 : index
    %c0_14 = arith.constant 0 : index
    %24 = vector.load %arg3[%c1_13, %c0_14] : memref<2x32xf32, #tpu.memory_space<vmem>>, vector<1x32xf32>
    %25 = vector.broadcast %23 : vector<2x1xf32> to vector<2x32xf32>
    %26 = vector.broadcast %24 : vector<1x32xf32> to vector<2x32xf32>
    %27 = arith.mulf %25, %26 : vector<2x32xf32>
    %28 = arith.addf %16, %27 : vector<2x32xf32>
    %29 = vector.extract_strided_slice %28 {offsets = [0, 0], sizes = [1, 32], strides = [1, 1]} : vector<2x32xf32> to vector<1x32xf32>
    %30 = vector.extract_strided_slice %28 {offsets = [1, 0], sizes = [1, 32], strides = [1, 1]} : vector<2x32xf32> to vector<1x32xf32>
    %31 = arith.addf %29, %30 : vector<1x32xf32>
    %32 = arith.negf %31 : vector<1x32xf32>
    %33 = math.exp %32 : vector<1x32xf32>
    %cst_15 = arith.constant 1.000000e+00 : f32
    %34 = vector.broadcast %cst_15 : f32 to vector<1x32xf32>
    %35 = arith.addf %34, %33 : vector<1x32xf32>
    %36 = arith.divf %34, %35 : vector<1x32xf32>
    %37 = vector.shape_cast %36 : vector<1x32xf32> to vector<1x32x1xf32>
    %38 = vector.broadcast %37 : vector<1x32x1xf32> to vector<1x32x256xf32>
    %39 = arith.mulf %0, %38 : vector<1x32x256xf32>
    %c0_16 = arith.constant 0 : index
    %c0_17 = arith.constant 0 : index
    %c0_18 = arith.constant 0 : index
    %40 = vector.load %arg6[%c0_16, %c0_17, %c0_18] : memref<1x32x256xf32, #tpu.memory_space<vmem>>, vector<1x32x256xf32>
    tpu.vector_store %arg6[%c0_16, %c0_17, %c0_18], %39 {strides = array<i32>} : memref<1x32x256xf32, #tpu.memory_space<vmem>>, vector<1x32x256xf32>,
    %cst_19 = arith.constant dense<0.000000e+00> : vector<1x256xf32>
    %41 = vector.multi_reduction <add>, %39, %cst_19 [1] : vector<1x32x256xf32> to vector<1x256xf32>
    %cst_20 = arith.constant 3.200000e+01 : f32
    %42 = vector.broadcast %cst_20 : f32 to vector<1x256xf32>
    %43 = arith.divf %41, %42 : vector<1x256xf32>
    %cst_21 = arith.constant dense<0xFF800000> : vector<1x256xf32>
    %44 = vector.multi_reduction <maximumf>, %39, %cst_21 [1] : vector<1x32x256xf32> to vector<1x256xf32>
    %cst_22 = arith.constant 0.000000e+00 : f32
    %45 = vector.broadcast %cst_22 : f32 to vector<1x128xf32>
    %c0_23 = arith.constant 0 : index
    %c0_24 = arith.constant 0 : index
    %46 = vector.load %arg7[%c0_23, %c0_24] : memref<1x512xf32, #tpu.memory_space<vmem>>, vector<1x128xf32>
    tpu.vector_store %arg7[%c0_23, %c0_24], %45 {strides = array<i32>} : memref<1x512xf32, #tpu.memory_space<vmem>>, vector<1x128xf32>,
    %c0_25 = arith.constant 0 : index
    %c384 = arith.constant 384 : index
    %47 = vector.load %arg7[%c0_25, %c384] : memref<1x512xf32, #tpu.memory_space<vmem>>, vector<1x128xf32>
    tpu.vector_store %arg7[%c0_25, %c384], %45 {strides = array<i32>} : memref<1x512xf32, #tpu.memory_space<vmem>>, vector<1x128xf32>,
    %c0_26 = arith.constant 0 : index
    %c0_27 = arith.constant 0 : index
    %48 = vector.load %arg8[%c0_26, %c0_27] : memref<1x512xf32, #tpu.memory_space<vmem>>, vector<1x128xf32>
    tpu.vector_store %arg8[%c0_26, %c0_27], %45 {strides = array<i32>} : memref<1x512xf32, #tpu.memory_space<vmem>>, vector<1x128xf32>,
    %c0_28 = arith.constant 0 : index
    %c384_29 = arith.constant 384 : index
    %49 = vector.load %arg8[%c0_28, %c384_29] : memref<1x512xf32, #tpu.memory_space<vmem>>, vector<1x128xf32>
    tpu.vector_store %arg8[%c0_28, %c384_29], %45 {strides = array<i32>} : memref<1x512xf32, #tpu.memory_space<vmem>>, vector<1x128xf32>,
    %c0_30 = arith.constant 0 : index
    %c128 = arith.constant 128 : index
    %50 = vector.load %arg7[%c0_30, %c128] : memref<1x512xf32, #tpu.memory_space<vmem>>, vector<1x256xf32>
    tpu.vector_store %arg7[%c0_30, %c128], %43 {strides = array<i32>} : memref<1x512xf32, #tpu.memory_space<vmem>>, vector<1x256xf32>,
    %c0_31 = arith.constant 0 : index
    %c128_32 = arith.constant 128 : index
    %51 = vector.load %arg8[%c0_31, %c128_32] : memref<1x512xf32, #tpu.memory_space<vmem>>, vector<1x256xf32>
    tpu.vector_store %arg8[%c0_31, %c128_32], %44 {strides = array<i32>} : memref<1x512xf32, #tpu.memory_space<vmem>>, vector<1x256xf32>,
    %c0_33 = arith.constant 0 : index
    %c77 = arith.constant 77 : index
    %52 = vector.load %arg7[%c0_33, %c77] : memref<1x512xf32, #tpu.memory_space<vmem>>, vector<1x256xf32>
    %c0_34 = arith.constant 0 : index
    %c77_35 = arith.constant 77 : index
    %53 = vector.load %arg8[%c0_34, %c77_35] : memref<1x512xf32, #tpu.memory_space<vmem>>, vector<1x256xf32>
    %c0_36 = arith.constant 0 : index
    %54 = memref.load %arg5[%c0_36] : memref<98xf32, #tpu.memory_space<smem>>
    %c49 = arith.constant 49 : index
    %55 = memref.load %arg5[%c49] : memref<98xf32, #tpu.memory_space<smem>>
    %56 = vector.broadcast %54 : f32 to vector<1x256xf32>
    %57 = arith.mulf %56, %52 : vector<1x256xf32>
    %58 = vector.broadcast %55 : f32 to vector<1x256xf32>
    %59 = arith.mulf %58, %53 : vector<1x256xf32>
    %60 = arith.addf %57, %59 : vector<1x256xf32>
    %c0_37 = arith.constant 0 : index
    %c93 = arith.constant 93 : index
    %61 = vector.load %arg7[%c0_37, %c93] : memref<1x512xf32, #tpu.memory_space<vmem>>, vector<1x256xf32>
    %c0_38 = arith.constant 0 : index
    %c93_39 = arith.constant 93 : index
    %62 = vector.load %arg8[%c0_38, %c93_39] : memref<1x512xf32, #tpu.memory_space<vmem>>, vector<1x256xf32>
    %c7 = arith.constant 7 : index
    %63 = memref.load %arg5[%c7] : memref<98xf32, #tpu.memory_space<smem>>
    %c56 = arith.constant 56 : index
    %64 = memref.load %arg5[%c56] : memref<98xf32, #tpu.memory_space<smem>>
    %65 = vector.broadcast %63 : f32 to vector<1x256xf32>
    %66 = arith.mulf %65, %61 : vector<1x256xf32>
    %67 = vector.broadcast %64 : f32 to vector<1x256xf32>
    %68 = arith.mulf %67, %62 : vector<1x256xf32>
    %69 = arith.addf %66, %68 : vector<1x256xf32>
    %70 = arith.addf %60, %69 : vector<1x256xf32>
    %c0_40 = arith.constant 0 : index
    %c109 = arith.constant 109 : index
    %71 = vector.load %arg7[%c0_40, %c109] : memref<1x512xf32, #tpu.memory_space<vmem>>, vector<1x256xf32>
    %c0_41 = arith.constant 0 : index
    %c109_42 = arith.constant 109 : index
    %72 = vector.load %arg8[%c0_41, %c109_42] : memref<1x512xf32, #tpu.memory_space<vmem>>, vector<1x256xf32>
    %c14 = arith.constant 14 : index
    %73 = memref.load %arg5[%c14] : memref<98xf32, #tpu.memory_space<smem>>
    %c63 = arith.constant 63 : index
    %74 = memref.load %arg5[%c63] : memref<98xf32, #tpu.memory_space<smem>>
    %75 = vector.broadcast %73 : f32 to vector<1x256xf32>
    %76 = arith.mulf %75, %71 : vector<1x256xf32>
    %77 = vector.broadcast %74 : f32 to vector<1x256xf32>
    %78 = arith.mulf %77, %72 : vector<1x256xf32>
    %79 = arith.addf %76, %78 : vector<1x256xf32>
    %80 = arith.addf %70, %79 : vector<1x256xf32>
    %c0_43 = arith.constant 0 : index
    %c125 = arith.constant 125 : index
    %81 = vector.load %arg7[%c0_43, %c125] : memref<1x512xf32, #tpu.memory_space<vmem>>, vector<1x256xf32>
    %c0_44 = arith.constant 0 : index
    %c125_45 = arith.constant 125 : index
    %82 = vector.load %arg8[%c0_44, %c125_45] : memref<1x512xf32, #tpu.memory_space<vmem>>, vector<1x256xf32>
    %c21 = arith.constant 21 : index
    %83 = memref.load %arg5[%c21] : memref<98xf32, #tpu.memory_space<smem>>
    %c70 = arith.constant 70 : index
    %84 = memref.load %arg5[%c70] : memref<98xf32, #tpu.memory_space<smem>>
    %85 = vector.broadcast %83 : f32 to vector<1x256xf32>
    %86 = arith.mulf %85, %81 : vector<1x256xf32>
    %87 = vector.broadcast %84 : f32 to vector<1x256xf32>
    %88 = arith.mulf %87, %82 : vector<1x256xf32>
    %89 = arith.addf %86, %88 : vector<1x256xf32>
    %90 = arith.addf %80, %89 : vector<1x256xf32>
    %c0_46 = arith.constant 0 : index
    %c141 = arith.constant 141 : index
    %91 = vector.load %arg7[%c0_46, %c141] : memref<1x512xf32, #tpu.memory_space<vmem>>, vector<1x256xf32>
    %c0_47 = arith.constant 0 : index
    %c141_48 = arith.constant 141 : index
    %92 = vector.load %arg8[%c0_47, %c141_48] : memref<1x512xf32, #tpu.memory_space<vmem>>, vector<1x256xf32>
    %c28 = arith.constant 28 : index
    %93 = memref.load %arg5[%c28] : memref<98xf32, #tpu.memory_space<smem>>
    %c77_49 = arith.constant 77 : index
    %94 = memref.load %arg5[%c77_49] : memref<98xf32, #tpu.memory_space<smem>>
    %95 = vector.broadcast %93 : f32 to vector<1x256xf32>
    %96 = arith.mulf %95, %91 : vector<1x256xf32>
    %97 = vector.broadcast %94 : f32 to vector<1x256xf32>
    %98 = arith.mulf %97, %92 : vector<1x256xf32>
    %99 = arith.addf %96, %98 : vector<1x256xf32>
    %100 = arith.addf %90, %99 : vector<1x256xf32>
    %c0_50 = arith.constant 0 : index
    %c157 = arith.constant 157 : index
    %101 = vector.load %arg7[%c0_50, %c157] : memref<1x512xf32, #tpu.memory_space<vmem>>, vector<1x256xf32>
    %c0_51 = arith.constant 0 : index
    %c157_52 = arith.constant 157 : index
    %102 = vector.load %arg8[%c0_51, %c157_52] : memref<1x512xf32, #tpu.memory_space<vmem>>, vector<1x256xf32>
    %c35 = arith.constant 35 : index
    %103 = memref.load %arg5[%c35] : memref<98xf32, #tpu.memory_space<smem>>
    %c84 = arith.constant 84 : index
    %104 = memref.load %arg5[%c84] : memref<98xf32, #tpu.memory_space<smem>>
    %105 = vector.broadcast %103 : f32 to vector<1x256xf32>
    %106 = arith.mulf %105, %101 : vector<1x256xf32>
    %107 = vector.broadcast %104 : f32 to vector<1x256xf32>
    %108 = arith.mulf %107, %102 : vector<1x256xf32>
    %109 = arith.addf %106, %108 : vector<1x256xf32>
    %110 = arith.addf %100, %109 : vector<1x256xf32>
    %c0_53 = arith.constant 0 : index
    %c173 = arith.constant 173 : index
    %111 = vector.load %arg7[%c0_53, %c173] : memref<1x512xf32, #tpu.memory_space<vmem>>, vector<1x256xf32>
    %c0_54 = arith.constant 0 : index
    %c173_55 = arith.constant 173 : index
    %112 = vector.load %arg8[%c0_54, %c173_55] : memref<1x512xf32, #tpu.memory_space<vmem>>, vector<1x256xf32>
    %c42 = arith.constant 42 : index
    %113 = memref.load %arg5[%c42] : memref<98xf32, #tpu.memory_space<smem>>
    %c91 = arith.constant 91 : index
    %114 = memref.load %arg5[%c91] : memref<98xf32, #tpu.memory_space<smem>>
    %115 = vector.broadcast %113 : f32 to vector<1x256xf32>
    %116 = arith.mulf %115, %111 : vector<1x256xf32>
    %117 = vector.broadcast %114 : f32 to vector<1x256xf32>
    %118 = arith.mulf %117, %112 : vector<1x256xf32>
    %119 = arith.addf %116, %118 : vector<1x256xf32>
    %120 = arith.addf %110, %119 : vector<1x256xf32>
    %c0_56 = arith.constant 0 : index
    %c0_57 = arith.constant 0 : index
    %121 = vector.load %arg4[%c0_56, %c0_57] : memref<7x256xf32, #tpu.memory_space<vmem>>, vector<1x256xf32>
    %122 = arith.mulf %120, %121 : vector<1x256xf32>
    %c0_58 = arith.constant 0 : index
    %c78 = arith.constant 78 : index
    %123 = vector.load %arg7[%c0_58, %c78] : memref<1x512xf32, #tpu.memory_space<vmem>>, vector<1x256xf32>
    %c0_59 = arith.constant 0 : index
    %c78_60 = arith.constant 78 : index
    %124 = vector.load %arg8[%c0_59, %c78_60] : memref<1x512xf32, #tpu.memory_space<vmem>>, vector<1x256xf32>
    %c1_61 = arith.constant 1 : index
    %125 = memref.load %arg5[%c1_61] : memref<98xf32, #tpu.memory_space<smem>>
    %c50 = arith.constant 50 : index
    %126 = memref.load %arg5[%c50] : memref<98xf32, #tpu.memory_space<smem>>
    %127 = vector.broadcast %125 : f32 to vector<1x256xf32>
    %128 = arith.mulf %127, %123 : vector<1x256xf32>
    %129 = vector.broadcast %126 : f32 to vector<1x256xf32>
    %130 = arith.mulf %129, %124 : vector<1x256xf32>
    %131 = arith.addf %128, %130 : vector<1x256xf32>
    %c0_62 = arith.constant 0 : index
    %c94 = arith.constant 94 : index
    %132 = vector.load %arg7[%c0_62, %c94] : memref<1x512xf32, #tpu.memory_space<vmem>>, vector<1x256xf32>
    %c0_63 = arith.constant 0 : index
    %c94_64 = arith.constant 94 : index
    %133 = vector.load %arg8[%c0_63, %c94_64] : memref<1x512xf32, #tpu.memory_space<vmem>>, vector<1x256xf32>
    %c8 = arith.constant 8 : index
    %134 = memref.load %arg5[%c8] : memref<98xf32, #tpu.memory_space<smem>>
    %c57 = arith.constant 57 : index
    %135 = memref.load %arg5[%c57] : memref<98xf32, #tpu.memory_space<smem>>
    %136 = vector.broadcast %134 : f32 to vector<1x256xf32>
    %137 = arith.mulf %136, %132 : vector<1x256xf32>
    %138 = vector.broadcast %135 : f32 to vector<1x256xf32>
    %139 = arith.mulf %138, %133 : vector<1x256xf32>
    %140 = arith.addf %137, %139 : vector<1x256xf32>
    %141 = arith.addf %131, %140 : vector<1x256xf32>
    %c0_65 = arith.constant 0 : index
    %c110 = arith.constant 110 : index
    %142 = vector.load %arg7[%c0_65, %c110] : memref<1x512xf32, #tpu.memory_space<vmem>>, vector<1x256xf32>
    %c0_66 = arith.constant 0 : index
    %c110_67 = arith.constant 110 : index
    %143 = vector.load %arg8[%c0_66, %c110_67] : memref<1x512xf32, #tpu.memory_space<vmem>>, vector<1x256xf32>
    %c15 = arith.constant 15 : index
    %144 = memref.load %arg5[%c15] : memref<98xf32, #tpu.memory_space<smem>>
    %c64 = arith.constant 64 : index
    %145 = memref.load %arg5[%c64] : memref<98xf32, #tpu.memory_space<smem>>
    %146 = vector.broadcast %144 : f32 to vector<1x256xf32>
    %147 = arith.mulf %146, %142 : vector<1x256xf32>
    %148 = vector.broadcast %145 : f32 to vector<1x256xf32>
    %149 = arith.mulf %148, %143 : vector<1x256xf32>
    %150 = arith.addf %147, %149 : vector<1x256xf32>
    %151 = arith.addf %141, %150 : vector<1x256xf32>
    %c0_68 = arith.constant 0 : index
    %c126 = arith.constant 126 : index
    %152 = vector.load %arg7[%c0_68, %c126] : memref<1x512xf32, #tpu.memory_space<vmem>>, vector<1x256xf32>
    %c0_69 = arith.constant 0 : index
    %c126_70 = arith.constant 126 : index
    %153 = vector.load %arg8[%c0_69, %c126_70] : memref<1x512xf32, #tpu.memory_space<vmem>>, vector<1x256xf32>
    %c22 = arith.constant 22 : index
    %154 = memref.load %arg5[%c22] : memref<98xf32, #tpu.memory_space<smem>>
    %c71 = arith.constant 71 : index
    %155 = memref.load %arg5[%c71] : memref<98xf32, #tpu.memory_space<smem>>
    %156 = vector.broadcast %154 : f32 to vector<1x256xf32>
    %157 = arith.mulf %156, %152 : vector<1x256xf32>
    %158 = vector.broadcast %155 : f32 to vector<1x256xf32>
    %159 = arith.mulf %158, %153 : vector<1x256xf32>
    %160 = arith.addf %157, %159 : vector<1x256xf32>
    %161 = arith.addf %151, %160 : vector<1x256xf32>
    %c0_71 = arith.constant 0 : index
    %c142 = arith.constant 142 : index
    %162 = vector.load %arg7[%c0_71, %c142] : memref<1x512xf32, #tpu.memory_space<vmem>>, vector<1x256xf32>
    %c0_72 = arith.constant 0 : index
    %c142_73 = arith.constant 142 : index
    %163 = vector.load %arg8[%c0_72, %c142_73] : memref<1x512xf32, #tpu.memory_space<vmem>>, vector<1x256xf32>
    %c29 = arith.constant 29 : index
    %164 = memref.load %arg5[%c29] : memref<98xf32, #tpu.memory_space<smem>>
    %c78_74 = arith.constant 78 : index
    %165 = memref.load %arg5[%c78_74] : memref<98xf32, #tpu.memory_space<smem>>
    %166 = vector.broadcast %164 : f32 to vector<1x256xf32>
    %167 = arith.mulf %166, %162 : vector<1x256xf32>
    %168 = vector.broadcast %165 : f32 to vector<1x256xf32>
    %169 = arith.mulf %168, %163 : vector<1x256xf32>
    %170 = arith.addf %167, %169 : vector<1x256xf32>
    %171 = arith.addf %161, %170 : vector<1x256xf32>
    %c0_75 = arith.constant 0 : index
    %c158 = arith.constant 158 : index
    %172 = vector.load %arg7[%c0_75, %c158] : memref<1x512xf32, #tpu.memory_space<vmem>>, vector<1x256xf32>
    %c0_76 = arith.constant 0 : index
    %c158_77 = arith.constant 158 : index
    %173 = vector.load %arg8[%c0_76, %c158_77] : memref<1x512xf32, #tpu.memory_space<vmem>>, vector<1x256xf32>
    %c36 = arith.constant 36 : index
    %174 = memref.load %arg5[%c36] : memref<98xf32, #tpu.memory_space<smem>>
    %c85 = arith.constant 85 : index
    %175 = memref.load %arg5[%c85] : memref<98xf32, #tpu.memory_space<smem>>
    %176 = vector.broadcast %174 : f32 to vector<1x256xf32>
    %177 = arith.mulf %176, %172 : vector<1x256xf32>
    %178 = vector.broadcast %175 : f32 to vector<1x256xf32>
    %179 = arith.mulf %178, %173 : vector<1x256xf32>
    %180 = arith.addf %177, %179 : vector<1x256xf32>
    %181 = arith.addf %171, %180 : vector<1x256xf32>
    %c0_78 = arith.constant 0 : index
    %c174 = arith.constant 174 : index
    %182 = vector.load %arg7[%c0_78, %c174] : memref<1x512xf32, #tpu.memory_space<vmem>>, vector<1x256xf32>
    %c0_79 = arith.constant 0 : index
    %c174_80 = arith.constant 174 : index
    %183 = vector.load %arg8[%c0_79, %c174_80] : memref<1x512xf32, #tpu.memory_space<vmem>>, vector<1x256xf32>
    %c43 = arith.constant 43 : index
    %184 = memref.load %arg5[%c43] : memref<98xf32, #tpu.memory_space<smem>>
    %c92 = arith.constant 92 : index
    %185 = memref.load %arg5[%c92] : memref<98xf32, #tpu.memory_space<smem>>
    %186 = vector.broadcast %184 : f32 to vector<1x256xf32>
    %187 = arith.mulf %186, %182 : vector<1x256xf32>
    %188 = vector.broadcast %185 : f32 to vector<1x256xf32>
    %189 = arith.mulf %188, %183 : vector<1x256xf32>
    %190 = arith.addf %187, %189 : vector<1x256xf32>
    %191 = arith.addf %181, %190 : vector<1x256xf32>
    %c1_81 = arith.constant 1 : index
    %c0_82 = arith.constant 0 : index
    %192 = vector.load %arg4[%c1_81, %c0_82] : memref<7x256xf32, #tpu.memory_space<vmem>>, vector<1x256xf32>
    %193 = arith.mulf %191, %192 : vector<1x256xf32>
    %194 = arith.addf %122, %193 : vector<1x256xf32>
    %c0_83 = arith.constant 0 : index
    %c79 = arith.constant 79 : index
    %195 = vector.load %arg7[%c0_83, %c79] : memref<1x512xf32, #tpu.memory_space<vmem>>, vector<1x256xf32>
    %c0_84 = arith.constant 0 : index
    %c79_85 = arith.constant 79 : index
    %196 = vector.load %arg8[%c0_84, %c79_85] : memref<1x512xf32, #tpu.memory_space<vmem>>, vector<1x256xf32>
    %c2 = arith.constant 2 : index
    %197 = memref.load %arg5[%c2] : memref<98xf32, #tpu.memory_space<smem>>
    %c51 = arith.constant 51 : index
    %198 = memref.load %arg5[%c51] : memref<98xf32, #tpu.memory_space<smem>>
    %199 = vector.broadcast %197 : f32 to vector<1x256xf32>
    %200 = arith.mulf %199, %195 : vector<1x256xf32>
    %201 = vector.broadcast %198 : f32 to vector<1x256xf32>
    %202 = arith.mulf %201, %196 : vector<1x256xf32>
    %203 = arith.addf %200, %202 : vector<1x256xf32>
    %c0_86 = arith.constant 0 : index
    %c95 = arith.constant 95 : index
    %204 = vector.load %arg7[%c0_86, %c95] : memref<1x512xf32, #tpu.memory_space<vmem>>, vector<1x256xf32>
    %c0_87 = arith.constant 0 : index
    %c95_88 = arith.constant 95 : index
    %205 = vector.load %arg8[%c0_87, %c95_88] : memref<1x512xf32, #tpu.memory_space<vmem>>, vector<1x256xf32>
    %c9 = arith.constant 9 : index
    %206 = memref.load %arg5[%c9] : memref<98xf32, #tpu.memory_space<smem>>
    %c58 = arith.constant 58 : index
    %207 = memref.load %arg5[%c58] : memref<98xf32, #tpu.memory_space<smem>>
    %208 = vector.broadcast %206 : f32 to vector<1x256xf32>
    %209 = arith.mulf %208, %204 : vector<1x256xf32>
    %210 = vector.broadcast %207 : f32 to vector<1x256xf32>
    %211 = arith.mulf %210, %205 : vector<1x256xf32>
    %212 = arith.addf %209, %211 : vector<1x256xf32>
    %213 = arith.addf %203, %212 : vector<1x256xf32>
    %c0_89 = arith.constant 0 : index
    %c111 = arith.constant 111 : index
    %214 = vector.load %arg7[%c0_89, %c111] : memref<1x512xf32, #tpu.memory_space<vmem>>, vector<1x256xf32>
    %c0_90 = arith.constant 0 : index
    %c111_91 = arith.constant 111 : index
    %215 = vector.load %arg8[%c0_90, %c111_91] : memref<1x512xf32, #tpu.memory_space<vmem>>, vector<1x256xf32>
    %c16 = arith.constant 16 : index
    %216 = memref.load %arg5[%c16] : memref<98xf32, #tpu.memory_space<smem>>
    %c65 = arith.constant 65 : index
    %217 = memref.load %arg5[%c65] : memref<98xf32, #tpu.memory_space<smem>>
    %218 = vector.broadcast %216 : f32 to vector<1x256xf32>
    %219 = arith.mulf %218, %214 : vector<1x256xf32>
    %220 = vector.broadcast %217 : f32 to vector<1x256xf32>
    %221 = arith.mulf %220, %215 : vector<1x256xf32>
    %222 = arith.addf %219, %221 : vector<1x256xf32>
    %223 = arith.addf %213, %222 : vector<1x256xf32>
    %c0_92 = arith.constant 0 : index
    %c127 = arith.constant 127 : index
    %224 = vector.load %arg7[%c0_92, %c127] : memref<1x512xf32, #tpu.memory_space<vmem>>, vector<1x256xf32>
    %c0_93 = arith.constant 0 : index
    %c127_94 = arith.constant 127 : index
    %225 = vector.load %arg8[%c0_93, %c127_94] : memref<1x512xf32, #tpu.memory_space<vmem>>, vector<1x256xf32>
    %c23 = arith.constant 23 : index
    %226 = memref.load %arg5[%c23] : memref<98xf32, #tpu.memory_space<smem>>
    %c72 = arith.constant 72 : index
    %227 = memref.load %arg5[%c72] : memref<98xf32, #tpu.memory_space<smem>>
    %228 = vector.broadcast %226 : f32 to vector<1x256xf32>
    %229 = arith.mulf %228, %224 : vector<1x256xf32>
    %230 = vector.broadcast %227 : f32 to vector<1x256xf32>
    %231 = arith.mulf %230, %225 : vector<1x256xf32>
    %232 = arith.addf %229, %231 : vector<1x256xf32>
    %233 = arith.addf %223, %232 : vector<1x256xf32>
    %c0_95 = arith.constant 0 : index
    %c143 = arith.constant 143 : index
    %234 = vector.load %arg7[%c0_95, %c143] : memref<1x512xf32, #tpu.memory_space<vmem>>, vector<1x256xf32>
    %c0_96 = arith.constant 0 : index
    %c143_97 = arith.constant 143 : index
    %235 = vector.load %arg8[%c0_96, %c143_97] : memref<1x512xf32, #tpu.memory_space<vmem>>, vector<1x256xf32>
    %c30 = arith.constant 30 : index
    %236 = memref.load %arg5[%c30] : memref<98xf32, #tpu.memory_space<smem>>
    %c79_98 = arith.constant 79 : index
    %237 = memref.load %arg5[%c79_98] : memref<98xf32, #tpu.memory_space<smem>>
    %238 = vector.broadcast %236 : f32 to vector<1x256xf32>
    %239 = arith.mulf %238, %234 : vector<1x256xf32>
    %240 = vector.broadcast %237 : f32 to vector<1x256xf32>
    %241 = arith.mulf %240, %235 : vector<1x256xf32>
    %242 = arith.addf %239, %241 : vector<1x256xf32>
    %243 = arith.addf %233, %242 : vector<1x256xf32>
    %c0_99 = arith.constant 0 : index
    %c159 = arith.constant 159 : index
    %244 = vector.load %arg7[%c0_99, %c159] : memref<1x512xf32, #tpu.memory_space<vmem>>, vector<1x256xf32>
    %c0_100 = arith.constant 0 : index
    %c159_101 = arith.constant 159 : index
    %245 = vector.load %arg8[%c0_100, %c159_101] : memref<1x512xf32, #tpu.memory_space<vmem>>, vector<1x256xf32>
    %c37 = arith.constant 37 : index
    %246 = memref.load %arg5[%c37] : memref<98xf32, #tpu.memory_space<smem>>
    %c86 = arith.constant 86 : index
    %247 = memref.load %arg5[%c86] : memref<98xf32, #tpu.memory_space<smem>>
    %248 = vector.broadcast %246 : f32 to vector<1x256xf32>
    %249 = arith.mulf %248, %244 : vector<1x256xf32>
    %250 = vector.broadcast %247 : f32 to vector<1x256xf32>
    %251 = arith.mulf %250, %245 : vector<1x256xf32>
    %252 = arith.addf %249, %251 : vector<1x256xf32>
    %253 = arith.addf %243, %252 : vector<1x256xf32>
    %c0_102 = arith.constant 0 : index
    %c175 = arith.constant 175 : index
    %254 = vector.load %arg7[%c0_102, %c175] : memref<1x512xf32, #tpu.memory_space<vmem>>, vector<1x256xf32>
    %c0_103 = arith.constant 0 : index
    %c175_104 = arith.constant 175 : index
    %255 = vector.load %arg8[%c0_103, %c175_104] : memref<1x512xf32, #tpu.memory_space<vmem>>, vector<1x256xf32>
    %c44 = arith.constant 44 : index
    %256 = memref.load %arg5[%c44] : memref<98xf32, #tpu.memory_space<smem>>
    %c93_105 = arith.constant 93 : index
    %257 = memref.load %arg5[%c93_105] : memref<98xf32, #tpu.memory_space<smem>>
    %258 = vector.broadcast %256 : f32 to vector<1x256xf32>
    %259 = arith.mulf %258, %254 : vector<1x256xf32>
    %260 = vector.broadcast %257 : f32 to vector<1x256xf32>
    %261 = arith.mulf %260, %255 : vector<1x256xf32>
    %262 = arith.addf %259, %261 : vector<1x256xf32>
    %263 = arith.addf %253, %262 : vector<1x256xf32>
    %c2_106 = arith.constant 2 : index
    %c0_107 = arith.constant 0 : index
    %264 = vector.load %arg4[%c2_106, %c0_107] : memref<7x256xf32, #tpu.memory_space<vmem>>, vector<1x256xf32>
    %265 = arith.mulf %263, %264 : vector<1x256xf32>
    %266 = arith.addf %194, %265 : vector<1x256xf32>
    %c0_108 = arith.constant 0 : index
    %c80 = arith.constant 80 : index
    %267 = vector.load %arg7[%c0_108, %c80] : memref<1x512xf32, #tpu.memory_space<vmem>>, vector<1x256xf32>
    %c0_109 = arith.constant 0 : index
    %c80_110 = arith.constant 80 : index
    %268 = vector.load %arg8[%c0_109, %c80_110] : memref<1x512xf32, #tpu.memory_space<vmem>>, vector<1x256xf32>
    %c3 = arith.constant 3 : index
    %269 = memref.load %arg5[%c3] : memref<98xf32, #tpu.memory_space<smem>>
    %c52 = arith.constant 52 : index
    %270 = memref.load %arg5[%c52] : memref<98xf32, #tpu.memory_space<smem>>
    %271 = vector.broadcast %269 : f32 to vector<1x256xf32>
    %272 = arith.mulf %271, %267 : vector<1x256xf32>
    %273 = vector.broadcast %270 : f32 to vector<1x256xf32>
    %274 = arith.mulf %273, %268 : vector<1x256xf32>
    %275 = arith.addf %272, %274 : vector<1x256xf32>
    %c0_111 = arith.constant 0 : index
    %c96 = arith.constant 96 : index
    %276 = vector.load %arg7[%c0_111, %c96] : memref<1x512xf32, #tpu.memory_space<vmem>>, vector<1x256xf32>
    %c0_112 = arith.constant 0 : index
    %c96_113 = arith.constant 96 : index
    %277 = vector.load %arg8[%c0_112, %c96_113] : memref<1x512xf32, #tpu.memory_space<vmem>>, vector<1x256xf32>
    %c10 = arith.constant 10 : index
    %278 = memref.load %arg5[%c10] : memref<98xf32, #tpu.memory_space<smem>>
    %c59 = arith.constant 59 : index
    %279 = memref.load %arg5[%c59] : memref<98xf32, #tpu.memory_space<smem>>
    %280 = vector.broadcast %278 : f32 to vector<1x256xf32>
    %281 = arith.mulf %280, %276 : vector<1x256xf32>
    %282 = vector.broadcast %279 : f32 to vector<1x256xf32>
    %283 = arith.mulf %282, %277 : vector<1x256xf32>
    %284 = arith.addf %281, %283 : vector<1x256xf32>
    %285 = arith.addf %275, %284 : vector<1x256xf32>
    %c0_114 = arith.constant 0 : index
    %c112 = arith.constant 112 : index
    %286 = vector.load %arg7[%c0_114, %c112] : memref<1x512xf32, #tpu.memory_space<vmem>>, vector<1x256xf32>
    %c0_115 = arith.constant 0 : index
    %c112_116 = arith.constant 112 : index
    %287 = vector.load %arg8[%c0_115, %c112_116] : memref<1x512xf32, #tpu.memory_space<vmem>>, vector<1x256xf32>
    %c17 = arith.constant 17 : index
    %288 = memref.load %arg5[%c17] : memref<98xf32, #tpu.memory_space<smem>>
    %c66 = arith.constant 66 : index
    %289 = memref.load %arg5[%c66] : memref<98xf32, #tpu.memory_space<smem>>
    %290 = vector.broadcast %288 : f32 to vector<1x256xf32>
    %291 = arith.mulf %290, %286 : vector<1x256xf32>
    %292 = vector.broadcast %289 : f32 to vector<1x256xf32>
    %293 = arith.mulf %292, %287 : vector<1x256xf32>
    %294 = arith.addf %291, %293 : vector<1x256xf32>
    %295 = arith.addf %285, %294 : vector<1x256xf32>
    %c0_117 = arith.constant 0 : index
    %c128_118 = arith.constant 128 : index
    %296 = vector.load %arg7[%c0_117, %c128_118] : memref<1x512xf32, #tpu.memory_space<vmem>>, vector<1x256xf32>
    %c0_119 = arith.constant 0 : index
    %c128_120 = arith.constant 128 : index
    %297 = vector.load %arg8[%c0_119, %c128_120] : memref<1x512xf32, #tpu.memory_space<vmem>>, vector<1x256xf32>
    %c24 = arith.constant 24 : index
    %298 = memref.load %arg5[%c24] : memref<98xf32, #tpu.memory_space<smem>>
    %c73 = arith.constant 73 : index
    %299 = memref.load %arg5[%c73] : memref<98xf32, #tpu.memory_space<smem>>
    %300 = vector.broadcast %298 : f32 to vector<1x256xf32>
    %301 = arith.mulf %300, %296 : vector<1x256xf32>
    %302 = vector.broadcast %299 : f32 to vector<1x256xf32>
    %303 = arith.mulf %302, %297 : vector<1x256xf32>
    %304 = arith.addf %301, %303 : vector<1x256xf32>
    %305 = arith.addf %295, %304 : vector<1x256xf32>
    %c0_121 = arith.constant 0 : index
    %c144 = arith.constant 144 : index
    %306 = vector.load %arg7[%c0_121, %c144] : memref<1x512xf32, #tpu.memory_space<vmem>>, vector<1x256xf32>
    %c0_122 = arith.constant 0 : index
    %c144_123 = arith.constant 144 : index
    %307 = vector.load %arg8[%c0_122, %c144_123] : memref<1x512xf32, #tpu.memory_space<vmem>>, vector<1x256xf32>
    %c31 = arith.constant 31 : index
    %308 = memref.load %arg5[%c31] : memref<98xf32, #tpu.memory_space<smem>>
    %c80_124 = arith.constant 80 : index
    %309 = memref.load %arg5[%c80_124] : memref<98xf32, #tpu.memory_space<smem>>
    %310 = vector.broadcast %308 : f32 to vector<1x256xf32>
    %311 = arith.mulf %310, %306 : vector<1x256xf32>
    %312 = vector.broadcast %309 : f32 to vector<1x256xf32>
    %313 = arith.mulf %312, %307 : vector<1x256xf32>
    %314 = arith.addf %311, %313 : vector<1x256xf32>
    %315 = arith.addf %305, %314 : vector<1x256xf32>
    %c0_125 = arith.constant 0 : index
    %c160 = arith.constant 160 : index
    %316 = vector.load %arg7[%c0_125, %c160] : memref<1x512xf32, #tpu.memory_space<vmem>>, vector<1x256xf32>
    %c0_126 = arith.constant 0 : index
    %c160_127 = arith.constant 160 : index
    %317 = vector.load %arg8[%c0_126, %c160_127] : memref<1x512xf32, #tpu.memory_space<vmem>>, vector<1x256xf32>
    %c38 = arith.constant 38 : index
    %318 = memref.load %arg5[%c38] : memref<98xf32, #tpu.memory_space<smem>>
    %c87 = arith.constant 87 : index
    %319 = memref.load %arg5[%c87] : memref<98xf32, #tpu.memory_space<smem>>
    %320 = vector.broadcast %318 : f32 to vector<1x256xf32>
    %321 = arith.mulf %320, %316 : vector<1x256xf32>
    %322 = vector.broadcast %319 : f32 to vector<1x256xf32>
    %323 = arith.mulf %322, %317 : vector<1x256xf32>
    %324 = arith.addf %321, %323 : vector<1x256xf32>
    %325 = arith.addf %315, %324 : vector<1x256xf32>
    %c0_128 = arith.constant 0 : index
    %c176 = arith.constant 176 : index
    %326 = vector.load %arg7[%c0_128, %c176] : memref<1x512xf32, #tpu.memory_space<vmem>>, vector<1x256xf32>
    %c0_129 = arith.constant 0 : index
    %c176_130 = arith.constant 176 : index
    %327 = vector.load %arg8[%c0_129, %c176_130] : memref<1x512xf32, #tpu.memory_space<vmem>>, vector<1x256xf32>
    %c45 = arith.constant 45 : index
    %328 = memref.load %arg5[%c45] : memref<98xf32, #tpu.memory_space<smem>>
    %c94_131 = arith.constant 94 : index
    %329 = memref.load %arg5[%c94_131] : memref<98xf32, #tpu.memory_space<smem>>
    %330 = vector.broadcast %328 : f32 to vector<1x256xf32>
    %331 = arith.mulf %330, %326 : vector<1x256xf32>
    %332 = vector.broadcast %329 : f32 to vector<1x256xf32>
    %333 = arith.mulf %332, %327 : vector<1x256xf32>
    %334 = arith.addf %331, %333 : vector<1x256xf32>
    %335 = arith.addf %325, %334 : vector<1x256xf32>
    %c3_132 = arith.constant 3 : index
    %c0_133 = arith.constant 0 : index
    %336 = vector.load %arg4[%c3_132, %c0_133] : memref<7x256xf32, #tpu.memory_space<vmem>>, vector<1x256xf32>
    %337 = arith.mulf %335, %336 : vector<1x256xf32>
    %338 = arith.addf %266, %337 : vector<1x256xf32>
    %c0_134 = arith.constant 0 : index
    %c81 = arith.constant 81 : index
    %339 = vector.load %arg7[%c0_134, %c81] : memref<1x512xf32, #tpu.memory_space<vmem>>, vector<1x256xf32>
    %c0_135 = arith.constant 0 : index
    %c81_136 = arith.constant 81 : index
    %340 = vector.load %arg8[%c0_135, %c81_136] : memref<1x512xf32, #tpu.memory_space<vmem>>, vector<1x256xf32>
    %c4 = arith.constant 4 : index
    %341 = memref.load %arg5[%c4] : memref<98xf32, #tpu.memory_space<smem>>
    %c53 = arith.constant 53 : index
    %342 = memref.load %arg5[%c53] : memref<98xf32, #tpu.memory_space<smem>>
    %343 = vector.broadcast %341 : f32 to vector<1x256xf32>
    %344 = arith.mulf %343, %339 : vector<1x256xf32>
    %345 = vector.broadcast %342 : f32 to vector<1x256xf32>
    %346 = arith.mulf %345, %340 : vector<1x256xf32>
    %347 = arith.addf %344, %346 : vector<1x256xf32>
    %c0_137 = arith.constant 0 : index
    %c97 = arith.constant 97 : index
    %348 = vector.load %arg7[%c0_137, %c97] : memref<1x512xf32, #tpu.memory_space<vmem>>, vector<1x256xf32>
    %c0_138 = arith.constant 0 : index
    %c97_139 = arith.constant 97 : index
    %349 = vector.load %arg8[%c0_138, %c97_139] : memref<1x512xf32, #tpu.memory_space<vmem>>, vector<1x256xf32>
    %c11 = arith.constant 11 : index
    %350 = memref.load %arg5[%c11] : memref<98xf32, #tpu.memory_space<smem>>
    %c60 = arith.constant 60 : index
    %351 = memref.load %arg5[%c60] : memref<98xf32, #tpu.memory_space<smem>>
    %352 = vector.broadcast %350 : f32 to vector<1x256xf32>
    %353 = arith.mulf %352, %348 : vector<1x256xf32>
    %354 = vector.broadcast %351 : f32 to vector<1x256xf32>
    %355 = arith.mulf %354, %349 : vector<1x256xf32>
    %356 = arith.addf %353, %355 : vector<1x256xf32>
    %357 = arith.addf %347, %356 : vector<1x256xf32>
    %c0_140 = arith.constant 0 : index
    %c113 = arith.constant 113 : index
    %358 = vector.load %arg7[%c0_140, %c113] : memref<1x512xf32, #tpu.memory_space<vmem>>, vector<1x256xf32>
    %c0_141 = arith.constant 0 : index
    %c113_142 = arith.constant 113 : index
    %359 = vector.load %arg8[%c0_141, %c113_142] : memref<1x512xf32, #tpu.memory_space<vmem>>, vector<1x256xf32>
    %c18 = arith.constant 18 : index
    %360 = memref.load %arg5[%c18] : memref<98xf32, #tpu.memory_space<smem>>
    %c67 = arith.constant 67 : index
    %361 = memref.load %arg5[%c67] : memref<98xf32, #tpu.memory_space<smem>>
    %362 = vector.broadcast %360 : f32 to vector<1x256xf32>
    %363 = arith.mulf %362, %358 : vector<1x256xf32>
    %364 = vector.broadcast %361 : f32 to vector<1x256xf32>
    %365 = arith.mulf %364, %359 : vector<1x256xf32>
    %366 = arith.addf %363, %365 : vector<1x256xf32>
    %367 = arith.addf %357, %366 : vector<1x256xf32>
    %c0_143 = arith.constant 0 : index
    %c129 = arith.constant 129 : index
    %368 = vector.load %arg7[%c0_143, %c129] : memref<1x512xf32, #tpu.memory_space<vmem>>, vector<1x256xf32>
    %c0_144 = arith.constant 0 : index
    %c129_145 = arith.constant 129 : index
    %369 = vector.load %arg8[%c0_144, %c129_145] : memref<1x512xf32, #tpu.memory_space<vmem>>, vector<1x256xf32>
    %c25 = arith.constant 25 : index
    %370 = memref.load %arg5[%c25] : memref<98xf32, #tpu.memory_space<smem>>
    %c74 = arith.constant 74 : index
    %371 = memref.load %arg5[%c74] : memref<98xf32, #tpu.memory_space<smem>>
    %372 = vector.broadcast %370 : f32 to vector<1x256xf32>
    %373 = arith.mulf %372, %368 : vector<1x256xf32>
    %374 = vector.broadcast %371 : f32 to vector<1x256xf32>
    %375 = arith.mulf %374, %369 : vector<1x256xf32>
    %376 = arith.addf %373, %375 : vector<1x256xf32>
    %377 = arith.addf %367, %376 : vector<1x256xf32>
    %c0_146 = arith.constant 0 : index
    %c145 = arith.constant 145 : index
    %378 = vector.load %arg7[%c0_146, %c145] : memref<1x512xf32, #tpu.memory_space<vmem>>, vector<1x256xf32>
    %c0_147 = arith.constant 0 : index
    %c145_148 = arith.constant 145 : index
    %379 = vector.load %arg8[%c0_147, %c145_148] : memref<1x512xf32, #tpu.memory_space<vmem>>, vector<1x256xf32>
    %c32 = arith.constant 32 : index
    %380 = memref.load %arg5[%c32] : memref<98xf32, #tpu.memory_space<smem>>
    %c81_149 = arith.constant 81 : index
    %381 = memref.load %arg5[%c81_149] : memref<98xf32, #tpu.memory_space<smem>>
    %382 = vector.broadcast %380 : f32 to vector<1x256xf32>
    %383 = arith.mulf %382, %378 : vector<1x256xf32>
    %384 = vector.broadcast %381 : f32 to vector<1x256xf32>
    %385 = arith.mulf %384, %379 : vector<1x256xf32>
    %386 = arith.addf %383, %385 : vector<1x256xf32>
    %387 = arith.addf %377, %386 : vector<1x256xf32>
    %c0_150 = arith.constant 0 : index
    %c161 = arith.constant 161 : index
    %388 = vector.load %arg7[%c0_150, %c161] : memref<1x512xf32, #tpu.memory_space<vmem>>, vector<1x256xf32>
    %c0_151 = arith.constant 0 : index
    %c161_152 = arith.constant 161 : index
    %389 = vector.load %arg8[%c0_151, %c161_152] : memref<1x512xf32, #tpu.memory_space<vmem>>, vector<1x256xf32>
    %c39 = arith.constant 39 : index
    %390 = memref.load %arg5[%c39] : memref<98xf32, #tpu.memory_space<smem>>
    %c88 = arith.constant 88 : index
    %391 = memref.load %arg5[%c88] : memref<98xf32, #tpu.memory_space<smem>>
    %392 = vector.broadcast %390 : f32 to vector<1x256xf32>
    %393 = arith.mulf %392, %388 : vector<1x256xf32>
    %394 = vector.broadcast %391 : f32 to vector<1x256xf32>
    %395 = arith.mulf %394, %389 : vector<1x256xf32>
    %396 = arith.addf %393, %395 : vector<1x256xf32>
    %397 = arith.addf %387, %396 : vector<1x256xf32>
    %c0_153 = arith.constant 0 : index
    %c177 = arith.constant 177 : index
    %398 = vector.load %arg7[%c0_153, %c177] : memref<1x512xf32, #tpu.memory_space<vmem>>, vector<1x256xf32>
    %c0_154 = arith.constant 0 : index
    %c177_155 = arith.constant 177 : index
    %399 = vector.load %arg8[%c0_154, %c177_155] : memref<1x512xf32, #tpu.memory_space<vmem>>, vector<1x256xf32>
    %c46 = arith.constant 46 : index
    %400 = memref.load %arg5[%c46] : memref<98xf32, #tpu.memory_space<smem>>
    %c95_156 = arith.constant 95 : index
    %401 = memref.load %arg5[%c95_156] : memref<98xf32, #tpu.memory_space<smem>>
    %402 = vector.broadcast %400 : f32 to vector<1x256xf32>
    %403 = arith.mulf %402, %398 : vector<1x256xf32>
    %404 = vector.broadcast %401 : f32 to vector<1x256xf32>
    %405 = arith.mulf %404, %399 : vector<1x256xf32>
    %406 = arith.addf %403, %405 : vector<1x256xf32>
    %407 = arith.addf %397, %406 : vector<1x256xf32>
    %c4_157 = arith.constant 4 : index
    %c0_158 = arith.constant 0 : index
    %408 = vector.load %arg4[%c4_157, %c0_158] : memref<7x256xf32, #tpu.memory_space<vmem>>, vector<1x256xf32>
    %409 = arith.mulf %407, %408 : vector<1x256xf32>
    %410 = arith.addf %338, %409 : vector<1x256xf32>
    %c0_159 = arith.constant 0 : index
    %c82 = arith.constant 82 : index
    %411 = vector.load %arg7[%c0_159, %c82] : memref<1x512xf32, #tpu.memory_space<vmem>>, vector<1x256xf32>
    %c0_160 = arith.constant 0 : index
    %c82_161 = arith.constant 82 : index
    %412 = vector.load %arg8[%c0_160, %c82_161] : memref<1x512xf32, #tpu.memory_space<vmem>>, vector<1x256xf32>
    %c5 = arith.constant 5 : index
    %413 = memref.load %arg5[%c5] : memref<98xf32, #tpu.memory_space<smem>>
    %c54 = arith.constant 54 : index
    %414 = memref.load %arg5[%c54] : memref<98xf32, #tpu.memory_space<smem>>
    %415 = vector.broadcast %413 : f32 to vector<1x256xf32>
    %416 = arith.mulf %415, %411 : vector<1x256xf32>
    %417 = vector.broadcast %414 : f32 to vector<1x256xf32>
    %418 = arith.mulf %417, %412 : vector<1x256xf32>
    %419 = arith.addf %416, %418 : vector<1x256xf32>
    %c0_162 = arith.constant 0 : index
    %c98 = arith.constant 98 : index
    %420 = vector.load %arg7[%c0_162, %c98] : memref<1x512xf32, #tpu.memory_space<vmem>>, vector<1x256xf32>
    %c0_163 = arith.constant 0 : index
    %c98_164 = arith.constant 98 : index
    %421 = vector.load %arg8[%c0_163, %c98_164] : memref<1x512xf32, #tpu.memory_space<vmem>>, vector<1x256xf32>
    %c12 = arith.constant 12 : index
    %422 = memref.load %arg5[%c12] : memref<98xf32, #tpu.memory_space<smem>>
    %c61 = arith.constant 61 : index
    %423 = memref.load %arg5[%c61] : memref<98xf32, #tpu.memory_space<smem>>
    %424 = vector.broadcast %422 : f32 to vector<1x256xf32>
    %425 = arith.mulf %424, %420 : vector<1x256xf32>
    %426 = vector.broadcast %423 : f32 to vector<1x256xf32>
    %427 = arith.mulf %426, %421 : vector<1x256xf32>
    %428 = arith.addf %425, %427 : vector<1x256xf32>
    %429 = arith.addf %419, %428 : vector<1x256xf32>
    %c0_165 = arith.constant 0 : index
    %c114 = arith.constant 114 : index
    %430 = vector.load %arg7[%c0_165, %c114] : memref<1x512xf32, #tpu.memory_space<vmem>>, vector<1x256xf32>
    %c0_166 = arith.constant 0 : index
    %c114_167 = arith.constant 114 : index
    %431 = vector.load %arg8[%c0_166, %c114_167] : memref<1x512xf32, #tpu.memory_space<vmem>>, vector<1x256xf32>
    %c19 = arith.constant 19 : index
    %432 = memref.load %arg5[%c19] : memref<98xf32, #tpu.memory_space<smem>>
    %c68 = arith.constant 68 : index
    %433 = memref.load %arg5[%c68] : memref<98xf32, #tpu.memory_space<smem>>
    %434 = vector.broadcast %432 : f32 to vector<1x256xf32>
    %435 = arith.mulf %434, %430 : vector<1x256xf32>
    %436 = vector.broadcast %433 : f32 to vector<1x256xf32>
    %437 = arith.mulf %436, %431 : vector<1x256xf32>
    %438 = arith.addf %435, %437 : vector<1x256xf32>
    %439 = arith.addf %429, %438 : vector<1x256xf32>
    %c0_168 = arith.constant 0 : index
    %c130 = arith.constant 130 : index
    %440 = vector.load %arg7[%c0_168, %c130] : memref<1x512xf32, #tpu.memory_space<vmem>>, vector<1x256xf32>
    %c0_169 = arith.constant 0 : index
    %c130_170 = arith.constant 130 : index
    %441 = vector.load %arg8[%c0_169, %c130_170] : memref<1x512xf32, #tpu.memory_space<vmem>>, vector<1x256xf32>
    %c26 = arith.constant 26 : index
    %442 = memref.load %arg5[%c26] : memref<98xf32, #tpu.memory_space<smem>>
    %c75 = arith.constant 75 : index
    %443 = memref.load %arg5[%c75] : memref<98xf32, #tpu.memory_space<smem>>
    %444 = vector.broadcast %442 : f32 to vector<1x256xf32>
    %445 = arith.mulf %444, %440 : vector<1x256xf32>
    %446 = vector.broadcast %443 : f32 to vector<1x256xf32>
    %447 = arith.mulf %446, %441 : vector<1x256xf32>
    %448 = arith.addf %445, %447 : vector<1x256xf32>
    %449 = arith.addf %439, %448 : vector<1x256xf32>
    %c0_171 = arith.constant 0 : index
    %c146 = arith.constant 146 : index
    %450 = vector.load %arg7[%c0_171, %c146] : memref<1x512xf32, #tpu.memory_space<vmem>>, vector<1x256xf32>
    %c0_172 = arith.constant 0 : index
    %c146_173 = arith.constant 146 : index
    %451 = vector.load %arg8[%c0_172, %c146_173] : memref<1x512xf32, #tpu.memory_space<vmem>>, vector<1x256xf32>
    %c33 = arith.constant 33 : index
    %452 = memref.load %arg5[%c33] : memref<98xf32, #tpu.memory_space<smem>>
    %c82_174 = arith.constant 82 : index
    %453 = memref.load %arg5[%c82_174] : memref<98xf32, #tpu.memory_space<smem>>
    %454 = vector.broadcast %452 : f32 to vector<1x256xf32>
    %455 = arith.mulf %454, %450 : vector<1x256xf32>
    %456 = vector.broadcast %453 : f32 to vector<1x256xf32>
    %457 = arith.mulf %456, %451 : vector<1x256xf32>
    %458 = arith.addf %455, %457 : vector<1x256xf32>
    %459 = arith.addf %449, %458 : vector<1x256xf32>
    %c0_175 = arith.constant 0 : index
    %c162 = arith.constant 162 : index
    %460 = vector.load %arg7[%c0_175, %c162] : memref<1x512xf32, #tpu.memory_space<vmem>>, vector<1x256xf32>
    %c0_176 = arith.constant 0 : index
    %c162_177 = arith.constant 162 : index
    %461 = vector.load %arg8[%c0_176, %c162_177] : memref<1x512xf32, #tpu.memory_space<vmem>>, vector<1x256xf32>
    %c40 = arith.constant 40 : index
    %462 = memref.load %arg5[%c40] : memref<98xf32, #tpu.memory_space<smem>>
    %c89 = arith.constant 89 : index
    %463 = memref.load %arg5[%c89] : memref<98xf32, #tpu.memory_space<smem>>
    %464 = vector.broadcast %462 : f32 to vector<1x256xf32>
    %465 = arith.mulf %464, %460 : vector<1x256xf32>
    %466 = vector.broadcast %463 : f32 to vector<1x256xf32>
    %467 = arith.mulf %466, %461 : vector<1x256xf32>
    %468 = arith.addf %465, %467 : vector<1x256xf32>
    %469 = arith.addf %459, %468 : vector<1x256xf32>
    %c0_178 = arith.constant 0 : index
    %c178 = arith.constant 178 : index
    %470 = vector.load %arg7[%c0_178, %c178] : memref<1x512xf32, #tpu.memory_space<vmem>>, vector<1x256xf32>
    %c0_179 = arith.constant 0 : index
    %c178_180 = arith.constant 178 : index
    %471 = vector.load %arg8[%c0_179, %c178_180] : memref<1x512xf32, #tpu.memory_space<vmem>>, vector<1x256xf32>
    %c47 = arith.constant 47 : index
    %472 = memref.load %arg5[%c47] : memref<98xf32, #tpu.memory_space<smem>>
    %c96_181 = arith.constant 96 : index
    %473 = memref.load %arg5[%c96_181] : memref<98xf32, #tpu.memory_space<smem>>
    %474 = vector.broadcast %472 : f32 to vector<1x256xf32>
    %475 = arith.mulf %474, %470 : vector<1x256xf32>
    %476 = vector.broadcast %473 : f32 to vector<1x256xf32>
    %477 = arith.mulf %476, %471 : vector<1x256xf32>
    %478 = arith.addf %475, %477 : vector<1x256xf32>
    %479 = arith.addf %469, %478 : vector<1x256xf32>
    %c5_182 = arith.constant 5 : index
    %c0_183 = arith.constant 0 : index
    %480 = vector.load %arg4[%c5_182, %c0_183] : memref<7x256xf32, #tpu.memory_space<vmem>>, vector<1x256xf32>
    %481 = arith.mulf %479, %480 : vector<1x256xf32>
    %482 = arith.addf %410, %481 : vector<1x256xf32>
    %c0_184 = arith.constant 0 : index
    %c83 = arith.constant 83 : index
    %483 = vector.load %arg7[%c0_184, %c83] : memref<1x512xf32, #tpu.memory_space<vmem>>, vector<1x256xf32>
    %c0_185 = arith.constant 0 : index
    %c83_186 = arith.constant 83 : index
    %484 = vector.load %arg8[%c0_185, %c83_186] : memref<1x512xf32, #tpu.memory_space<vmem>>, vector<1x256xf32>
    %c6 = arith.constant 6 : index
    %485 = memref.load %arg5[%c6] : memref<98xf32, #tpu.memory_space<smem>>
    %c55 = arith.constant 55 : index
    %486 = memref.load %arg5[%c55] : memref<98xf32, #tpu.memory_space<smem>>
    %487 = vector.broadcast %485 : f32 to vector<1x256xf32>
    %488 = arith.mulf %487, %483 : vector<1x256xf32>
    %489 = vector.broadcast %486 : f32 to vector<1x256xf32>
    %490 = arith.mulf %489, %484 : vector<1x256xf32>
    %491 = arith.addf %488, %490 : vector<1x256xf32>
    %c0_187 = arith.constant 0 : index
    %c99 = arith.constant 99 : index
    %492 = vector.load %arg7[%c0_187, %c99] : memref<1x512xf32, #tpu.memory_space<vmem>>, vector<1x256xf32>
    %c0_188 = arith.constant 0 : index
    %c99_189 = arith.constant 99 : index
    %493 = vector.load %arg8[%c0_188, %c99_189] : memref<1x512xf32, #tpu.memory_space<vmem>>, vector<1x256xf32>
    %c13 = arith.constant 13 : index
    %494 = memref.load %arg5[%c13] : memref<98xf32, #tpu.memory_space<smem>>
    %c62 = arith.constant 62 : index
    %495 = memref.load %arg5[%c62] : memref<98xf32, #tpu.memory_space<smem>>
    %496 = vector.broadcast %494 : f32 to vector<1x256xf32>
    %497 = arith.mulf %496, %492 : vector<1x256xf32>
    %498 = vector.broadcast %495 : f32 to vector<1x256xf32>
    %499 = arith.mulf %498, %493 : vector<1x256xf32>
    %500 = arith.addf %497, %499 : vector<1x256xf32>
    %501 = arith.addf %491, %500 : vector<1x256xf32>
    %c0_190 = arith.constant 0 : index
    %c115 = arith.constant 115 : index
    %502 = vector.load %arg7[%c0_190, %c115] : memref<1x512xf32, #tpu.memory_space<vmem>>, vector<1x256xf32>
    %c0_191 = arith.constant 0 : index
    %c115_192 = arith.constant 115 : index
    %503 = vector.load %arg8[%c0_191, %c115_192] : memref<1x512xf32, #tpu.memory_space<vmem>>, vector<1x256xf32>
    %c20 = arith.constant 20 : index
    %504 = memref.load %arg5[%c20] : memref<98xf32, #tpu.memory_space<smem>>
    %c69 = arith.constant 69 : index
    %505 = memref.load %arg5[%c69] : memref<98xf32, #tpu.memory_space<smem>>
    %506 = vector.broadcast %504 : f32 to vector<1x256xf32>
    %507 = arith.mulf %506, %502 : vector<1x256xf32>
    %508 = vector.broadcast %505 : f32 to vector<1x256xf32>
    %509 = arith.mulf %508, %503 : vector<1x256xf32>
    %510 = arith.addf %507, %509 : vector<1x256xf32>
    %511 = arith.addf %501, %510 : vector<1x256xf32>
    %c0_193 = arith.constant 0 : index
    %c131 = arith.constant 131 : index
    %512 = vector.load %arg7[%c0_193, %c131] : memref<1x512xf32, #tpu.memory_space<vmem>>, vector<1x256xf32>
    %c0_194 = arith.constant 0 : index
    %c131_195 = arith.constant 131 : index
    %513 = vector.load %arg8[%c0_194, %c131_195] : memref<1x512xf32, #tpu.memory_space<vmem>>, vector<1x256xf32>
    %c27 = arith.constant 27 : index
    %514 = memref.load %arg5[%c27] : memref<98xf32, #tpu.memory_space<smem>>
    %c76 = arith.constant 76 : index
    %515 = memref.load %arg5[%c76] : memref<98xf32, #tpu.memory_space<smem>>
    %516 = vector.broadcast %514 : f32 to vector<1x256xf32>
    %517 = arith.mulf %516, %512 : vector<1x256xf32>
    %518 = vector.broadcast %515 : f32 to vector<1x256xf32>
    %519 = arith.mulf %518, %513 : vector<1x256xf32>
    %520 = arith.addf %517, %519 : vector<1x256xf32>
    %521 = arith.addf %511, %520 : vector<1x256xf32>
    %c0_196 = arith.constant 0 : index
    %c147 = arith.constant 147 : index
    %522 = vector.load %arg7[%c0_196, %c147] : memref<1x512xf32, #tpu.memory_space<vmem>>, vector<1x256xf32>
    %c0_197 = arith.constant 0 : index
    %c147_198 = arith.constant 147 : index
    %523 = vector.load %arg8[%c0_197, %c147_198] : memref<1x512xf32, #tpu.memory_space<vmem>>, vector<1x256xf32>
    %c34 = arith.constant 34 : index
    %524 = memref.load %arg5[%c34] : memref<98xf32, #tpu.memory_space<smem>>
    %c83_199 = arith.constant 83 : index
    %525 = memref.load %arg5[%c83_199] : memref<98xf32, #tpu.memory_space<smem>>
    %526 = vector.broadcast %524 : f32 to vector<1x256xf32>
    %527 = arith.mulf %526, %522 : vector<1x256xf32>
    %528 = vector.broadcast %525 : f32 to vector<1x256xf32>
    %529 = arith.mulf %528, %523 : vector<1x256xf32>
    %530 = arith.addf %527, %529 : vector<1x256xf32>
    %531 = arith.addf %521, %530 : vector<1x256xf32>
    %c0_200 = arith.constant 0 : index
    %c163 = arith.constant 163 : index
    %532 = vector.load %arg7[%c0_200, %c163] : memref<1x512xf32, #tpu.memory_space<vmem>>, vector<1x256xf32>
    %c0_201 = arith.constant 0 : index
    %c163_202 = arith.constant 163 : index
    %533 = vector.load %arg8[%c0_201, %c163_202] : memref<1x512xf32, #tpu.memory_space<vmem>>, vector<1x256xf32>
    %c41 = arith.constant 41 : index
    %534 = memref.load %arg5[%c41] : memref<98xf32, #tpu.memory_space<smem>>
    %c90 = arith.constant 90 : index
    %535 = memref.load %arg5[%c90] : memref<98xf32, #tpu.memory_space<smem>>
    %536 = vector.broadcast %534 : f32 to vector<1x256xf32>
    %537 = arith.mulf %536, %532 : vector<1x256xf32>
    %538 = vector.broadcast %535 : f32 to vector<1x256xf32>
    %539 = arith.mulf %538, %533 : vector<1x256xf32>
    %540 = arith.addf %537, %539 : vector<1x256xf32>
    %541 = arith.addf %531, %540 : vector<1x256xf32>
    %c0_203 = arith.constant 0 : index
    %c179 = arith.constant 179 : index
    %542 = vector.load %arg7[%c0_203, %c179] : memref<1x512xf32, #tpu.memory_space<vmem>>, vector<1x256xf32>
    %c0_204 = arith.constant 0 : index
    %c179_205 = arith.constant 179 : index
    %543 = vector.load %arg8[%c0_204, %c179_205] : memref<1x512xf32, #tpu.memory_space<vmem>>, vector<1x256xf32>
    %c48 = arith.constant 48 : index
    %544 = memref.load %arg5[%c48] : memref<98xf32, #tpu.memory_space<smem>>
    %c97_206 = arith.constant 97 : index
    %545 = memref.load %arg5[%c97_206] : memref<98xf32, #tpu.memory_space<smem>>
    %546 = vector.broadcast %544 : f32 to vector<1x256xf32>
    %547 = arith.mulf %546, %542 : vector<1x256xf32>
    %548 = vector.broadcast %545 : f32 to vector<1x256xf32>
    %549 = arith.mulf %548, %543 : vector<1x256xf32>
    %550 = arith.addf %547, %549 : vector<1x256xf32>
    %551 = arith.addf %541, %550 : vector<1x256xf32>
    %c6_207 = arith.constant 6 : index
    %c0_208 = arith.constant 0 : index
    %552 = vector.load %arg4[%c6_207, %c0_208] : memref<7x256xf32, #tpu.memory_space<vmem>>, vector<1x256xf32>
    %553 = arith.mulf %551, %552 : vector<1x256xf32>
    %554 = arith.addf %482, %553 : vector<1x256xf32>
    %555 = arith.negf %554 : vector<1x256xf32>
    %556 = math.exp %555 : vector<1x256xf32>
    %cst_209 = arith.constant 1.000000e+00 : f32
    %557 = vector.broadcast %cst_209 : f32 to vector<1x256xf32>
    %558 = arith.addf %557, %556 : vector<1x256xf32>
    %559 = arith.divf %557, %558 : vector<1x256xf32>
    %c0_210 = arith.constant 0 : index
    %c0_211 = arith.constant 0 : index
    %c0_212 = arith.constant 0 : index
    %560 = vector.load %arg6[%c0_210, %c0_211, %c0_212] : memref<1x32x256xf32, #tpu.memory_space<vmem>>, vector<1x32x256xf32>
    %561 = vector.shape_cast %559 : vector<1x256xf32> to vector<1x1x256xf32>
    %562 = vector.broadcast %561 : vector<1x1x256xf32> to vector<1x32x256xf32>
    %563 = arith.mulf %560, %562 : vector<1x32x256xf32>
    %c0_213 = arith.constant 0 : index
    %c0_214 = arith.constant 0 : index
    %c0_215 = arith.constant 0 : index
    %564 = vector.load %arg6[%c0_213, %c0_214, %c0_215] : memref<1x32x256xf32, #tpu.memory_space<vmem>>, vector<1x32x256xf32>
    tpu.vector_store %arg6[%c0_213, %c0_214, %c0_215], %563 {strides = array<i32>} : memref<1x32x256xf32, #tpu.memory_space<vmem>>, vector<1x32x256xf32>,
    return
  }
  func.func @transform_0(%arg0: i32) -> (i32, i32, i32) {
    %c0_i32 = arith.constant 0 : i32
    %c0_i32_0 = arith.constant 0 : i32
    %c0_i32_1 = arith.constant 0 : i32
    return %arg0, %c0_i32, %c0_i32_0 : i32, i32, i32
  }
  func.func @transform_1(%arg0: i32) -> (i32, i32) {
    %c0_i32 = arith.constant 0 : i32
    %c0_i32_0 = arith.constant 0 : i32
    %c0_i32_1 = arith.constant 0 : i32
    return %c0_i32, %c0_i32_0 : i32, i32
  }
  func.func @transform_2(%arg0: i32) -> (i32, i32) {
    %c0_i32 = arith.constant 0 : i32
    %c0_i32_0 = arith.constant 0 : i32
    %c0_i32_1 = arith.constant 0 : i32
    return %c0_i32, %c0_i32_0 : i32, i32
  }
  func.func @transform_3(%arg0: i32) -> (i32, i32) {
    %c0_i32 = arith.constant 0 : i32
    %c0_i32_0 = arith.constant 0 : i32
    %c0_i32_1 = arith.constant 0 : i32
    return %c0_i32, %c0_i32_0 : i32, i32
  }
  func.func @transform_4(%arg0: i32) -> i32 {
    %c0_i32 = arith.constant 0 : i32
    %c0_i32_0 = arith.constant 0 : i32
    return %c0_i32 : i32
  }
  func.func @transform_5(%arg0: i32) -> (i32, i32, i32) {
    %c0_i32 = arith.constant 0 : i32
    %c0_i32_0 = arith.constant 0 : i32
    %c0_i32_1 = arith.constant 0 : i32
    return %arg0, %c0_i32, %c0_i32_0 : i32, i32, i32
  }
}

</mosaic_0001>

<bundles_post_ra>
// kernel: cbam_pallas.1
= control target key start
LH: loop header
LB: loop body
LE: loop exit
PB: predicated region body
PF: predicated region fallthrough
CT: control target
= control target key end

     0   :  { %s2457_s0 = inlined_call_operand.vmem [shape: f32[2,32,256], index: 0, kind: input, shape index: {}]   ;;  %s2458_s1 = inlined_call_operand.vmem [shape: f32[2,32], index: 1, kind: input, shape index: {}]   ;;  %s2459_s2 = inlined_call_operand.vmem [shape: f32[2,32], index: 2, kind: input, shape index: {}]   ;;  %s2460_s3 = inlined_call_operand.vmem [shape: f32[7,256], index: 3, kind: input, shape index: {}]   ;;  %s2461_s4 = inlined_call_operand.vmem [shape: f32[98], index: 4, kind: input, shape index: {}]   ;;  %s2462_s5 = inlined_call_operand.vmem [shape: f32[2,32,256], index: 5, kind: output, shape index: {}]  }
   0x1   :  { %2503 = sst [smem:[#allocation35_spill]] %s2457_s0 }
   0x2   :  { %2504 = sst [smem:[#allocation36_spill]] %s2458_s1 }
   0x3   :  { %2505 = sst [smem:[#allocation37_spill]] %s2459_s2 }
   0x4   :  { %2506 = sst [smem:[#allocation38_spill]] %s2460_s3 }
   0x5   :  { %2507 = sst [smem:[#allocation39_spill]] %s2461_s4 }
   0x6   :  { %2508 = sst [smem:[#allocation40_spill]] %s2462_s5 }
   0x7   :  { %10 = vsyncpa [#allocation5], 0  ;;  %s1621_s18 = smov 0  }
   0x8 LB: > { %2509 = sst [smem:[#allocation7_spill]] %s1566_s18  ;;  %s1359_s19 = sadd.s32 4294967295, %s1566_s18   ;;  %s1566_s18 = sphi %s1621_s18, %s16_s18  }
   0x9   : > { %p1361_p0 = scmp.ge.s32.totalorder %s1566_s18, 1  ;;  %p157_p1 = scmp.lt.s32.totalorder %s1566_s18, 3 }
   0xa   : > { %s2510_s4 = sld [smem:[#allocation39_spill]]  ;;  %p1487_p3 = scmp.eq.s32.totalorder %s1359_s19, 0 }
   0xb   : > { %p158_p2 = pnand %p1361_p0, %p157_p1  ;;  %s1568_s23 = smov [#allocation4]  }
   0xd   : > { %p1483_p4 = pneg %p158_p2  ;;  %199 = sbr.rel (%p158_p2) target bundleno = 985 (0x3d9), region = 40 }
   0xf   : > { %p1484_p5 = pnand %p1487_p3, %p1483_p4 }
  0x10   : > { %s178_s22 = sshll.u32 %s2510_s4, 4  ;;  %s179_s22 = int_to_ptr.vmem [resolvable:$true] %s178_s22 }
  0x11   : > { %1486 = dma.vmem_to_smem (!%p1484_p5), %s179_s22, 16, %s1568_s23, [#allocation5]  }
  0x12   : > { %1561 = dma.done.wait (%p1487_p3), [#allocation5], 16  }
  0x13   : > { %1563 = vsyncadd (%p1487_p3), [#allocation5], 4294967280 }
  0x14   : > { %206 = sfence }
  0x15   : > { %p229_p6 = scmp.lt.s32.totalorder %s1359_s19, 1  ;;  %v286_v0 = vlaneseq  ;;  %v1569_v1 = vmov 0.0   ;;  %s2511_s0 = sld [smem:[#allocation35_spill]]  ;;  %v1570_v18 = vmov 256.0   ;;  %vm291_vm2 = vcmask 130112  }
  0x16   : > { %1529 = vrcp.f32 %v1570_v18  ;;  %vm295_vm3 = vcmask 195712   ;;  %vm299_vm4 = vcmask 261312   ;;  %vm314_vm5 = vcmask 1040384   ;;  %s2512_s1 = sld [smem:[#allocation36_spill]]  ;;  %s1571_s9 = smov 78  }
  0x17   : > { %s2595_s19 = smov (!%p229_p6, %s1359_s19), 1  ;;  %vm449_vm0 = vcmp.lt.s32.totalorder %v286_v0, 128  ;;  %v287_v28 = vand.u32 127, %v286_v0  ;;  %vm319_vm6 = vcmask 254976   ;;  %s2513_s3 = sld [smem:[#allocation38_spill]]  ;;  %v363_v63 = vshrl.u32 %v286_v0, 7 }
  0x18   : > { %451 = vst.msk [vmem:[#allocation2] sm:$0x1] %vm449_vm0, %v1569_v1  ;;  %s1477_s24 = sshll.u32 %s2595_s19, 6  ;;  %s2463_s12 = smov 80   ;;  %vm1798_vm12 = vcmp.lt.s32.totalorder %v286_v0, 256  ;;  %vm489_vm13 = vcmask 916480  }
  0x19   : > { %452 = vst.msk [vmem:[#allocation2 + $0x3] sm:$0x1] %vm449_vm0, %v1569_v1  ;;  %v289_v31 = vadd.s32 4294967288, %v287_v28  ;;  %v293_v34 = vadd.s32 4294967280, %v287_v28  ;;  %v297_v39 = vadd.s32 4294967272, %v287_v28  ;;  %1520 = vset.pattern.permute.xlu1 %v363_v63  ;;  %s2514_s2 = sld [smem:[#allocation37_spill]] }
  0x1a   : > { %453 = vst.msk [vmem:[#allocation3] sm:$0x1] %vm449_vm0, %v1569_v1  ;;  %s1573_s21 = smov 79   ;;  %s2515_s5 = sld [smem:[#allocation40_spill]]  ;;  %vm504_vm14 = vcmask 785408   ;;  %vm519_vm15 = vcmask 654336  }
  0x1b   : > { %s233_s27 = scalar_lea.vmem %s2511_s0, %s1477_s24  ;;  %454 = vst.msk [vmem:[#allocation3 + $0x3] sm:$0x1] %vm449_vm0, %v1569_v1  ;;  %s1713_s26 = sld [smem:[#allocation4 + $0x3b]]  ;;  %vm536_vm0 = vcmask 523264  }
  0x1c   : > { %v1641_v2 = vld [vmem:[%s233_s27] sm:$0xff]  ;;  %v1643_v3 = vld [vmem:[%s233_s27 + $0x8] sm:$0xff]  ;;  %v1655_v9 = vld [vmem:[%s233_s27 + $0x10] sm:$0xff]  ;;  %v1530_v19 = vpop.eup %1529  ;;  %s1717_s19 = sld [smem:[#allocation4 + $0x40]]  ;;  %s1575_s14 = smov 81  }
  0x1d   : > { %v1645_v4 = vld [vmem:[%s233_s27 + $0x20] sm:$0xff]  ;;  %v270_v5 = vmax.f32 %v1641_v2, %v1643_v3  ;;  %v247_v6 = vadd.f32 %v1643_v3, %v1641_v2  ;;  %v1651_v7 = vld [vmem:[%s233_s27 + $0x28] sm:$0xff]  ;;  %v1657_v10 = vld [vmem:[%s233_s27 + $0x18] sm:$0xff]  ;;  %v260_v20 = vmul.f32 256.0, %v1530_v19  ;;  %vm264_vm1 = vweird.f32 %v1530_v19  ;;  %s1725_s28 = sld [smem:[#allocation4 + $0xa]] }
  0x1e   : > { %v253_v8 = vadd.f32 %v1651_v7, %v1645_v4  ;;  %v1659_v11 = vld [vmem:[%s233_s27 + $0x30] sm:$0xff]  ;;  %v1661_v12 = vld [vmem:[%s233_s27 + $0x38] sm:$0xff]  ;;  %v273_v13 = vmax.f32 %v1655_v9, %v1657_v10  ;;  %v250_v14 = vadd.f32 %v1657_v10, %v1655_v9  ;;  %v276_v16 = vmax.f32 %v1645_v4, %v1651_v7  ;;  %v1525_v52 = vld [vmem:[%s2512_s1 + $0x1] ss:$0 sm:$0xff]  ;;  %s1719_s27 = sld [smem:[#allocation4 + $0x39]] }
  0x1f   : > { %271 = vmax.xlane.f32.xlu2 %v270_v5  ;;  %248 = vadd.xlane.f32.xlu0 %v247_v6  ;;  %v256_v15 = vadd.f32 %v1661_v12, %v1659_v11  ;;  %v279_v17 = vmax.f32 %v1659_v11, %v1661_v12  ;;  %v261_v21 = vsub.f32 1.0, %v260_v20  ;;  %v1526_v53 = vld [vmem:[%s2512_s1] ss:$0 sm:$0xff]  ;;  %v1398_v62 = vld [vmem:[%s2513_s3 + $0x1] ss:$8 sm:$0x3] }
  0x20   : > { %254 = vadd.xlane.f32.xlu1 %v253_v8  ;;  %v1428_v1 = vld [vmem:[%s2513_s3 + $0x3] ss:$8 sm:$0x3]  ;;  %v376_v5 = vadd.s32 16, %v363_v63  ;;  %v370_v6 = vadd.s32 8, %v363_v63  ;;  %s1707_s25 = scalar_lea.vmem %s2515_s5, %s1477_s24  ;;  %s1721_s24 = sld [smem:[#allocation4 + $0x42]] }
  0x21   : > { %v262_v22 = vmul.f32 %v1530_v19, %v261_v21  ;;  %v1413_v8 = vld [vmem:[%s2513_s3 + $0x2] ss:$8 sm:$0x3]  ;;  %2516 = sst [smem:[#allocation8_spill]] %s1707_s25 }
  0x22   : > { %1522 = vset.pattern.permute.xlu0 %v376_v5  ;;  %1521 = vset.pattern.permute.xlu2 %v370_v6  ;;  %s1727_s29 = sld [smem:[#allocation4 + $0xf]] }
  0x23   : > { %v263_v25 = vadd.f32 %v1530_v19, %v262_v22  ;;  %s1730_s30 = sld [smem:[#allocation4 + $0x8]] }
  0x24   : > { %s1733_s6 = sld [smem:[#allocation4 + $0x11]] }
  0x25   : > { %v265_v27 = vsel %vm264_vm1, %v1530_v19, %v263_v25  ;;  %s1735_s7 = sld [smem:[#allocation4 + $0x16]]  ;;  %vm551_vm1 = vcmask 392192  }
  0x26   : > { %s1737_s8 = sld [smem:[#allocation4 + $0x47]] }
  0x27   : > { %274 = vmax.xlane.f32.xlu2 %v273_v13  ;;  %251 = vadd.xlane.f32.xlu0 %v250_v14  ;;  %v1527_v13 = vld [vmem:[%s2514_s2 + $0x1] ss:$0 sm:$0xff]  ;;  %v1528_v14 = vld [vmem:[%s2514_s2] ss:$0 sm:$0xff]  ;;  %s1746_s13 = sld [smem:[#allocation4 + $0x3a]] }
  0x28   : > { %257 = vadd.xlane.f32.xlu1 %v256_v15  ;;  %s1750_s15 = sld [smem:[#allocation4 + $0x1e]] }
  0x29   : > { %s1754_s16 = sld [smem:[#allocation4 + $0x4f]] }
  0x2a   : > { %s1758_s17 = sld [smem:[#allocation4 + $0x1d]] }
  0x2b   : > { %s1761_s20 = sld [smem:[#allocation4 + $0x4e]] }
  0x2c   : > { %s1767_s22 = sld [smem:[#allocation4 + $0x41]] }
  0x2d   : > { %s1769_s23 = sld [smem:[#allocation4 + $0xc]] }
  0x2e   : > { %s1771_s10 = sld [smem:[#allocation4 + $0x3d]] }
  0x2f   : > { %277 = vmax.xlane.f32.xlu0 %v276_v16  ;;  %s1773_s11 = sld [smem:[#allocation4 + $0xb]] }
  0x30   : > { %280 = vmax.xlane.f32.xlu1 %v279_v17  ;;  %2517 = sst [smem:[#allocation9_spill]] %s1758_s17 }
  0x31   : > { %2518 = sst [smem:[#allocation10_spill]] %s1761_s20 }
  0x32   : > { %2520 = sst [smem:[#allocation12_spill]] %s1767_s22 }
  0x33   : > { %2521 = sst [smem:[#allocation13_spill]] %s1769_s23 }
  0x34   : > { %2522 = sst [smem:[#allocation14_spill]] %s1771_s10 }
  0x35   : > { %2523 = sst [smem:[#allocation15_spill]] %s1773_s11 }
  0x36   : > { %s1780_s0 = sld [smem:[#allocation4 + $0x48]] }
  0x37   : > { %s1782_s1 = sld [smem:[#allocation4 + $0x1f]] }
  0x38   : > { %s1784_s2 = sld [smem:[#allocation4 + $0x50]] }
  0x39   : > { %s1788_s4 = sld [smem:[#allocation4 + $0x18]] }
  0x3a   : > { %s1790_s5 = sld [smem:[#allocation4 + $0x49]] }
  0x3b   : > { %s1792_s18 = sld [smem:[#allocation4 + $0x24]] }
  0x3c   : > { %2526 = sst [smem:[#allocation18_spill]] %s1780_s0 }
  0x3d   : > { %2527 = sst [smem:[#allocation19_spill]] %s1782_s1 }
  0x3e   : > { %2528 = sst [smem:[#allocation20_spill]] %s1784_s2 }
  0x3f   : > { %2529 = sst [smem:[#allocation21_spill]] %s1788_s4 }
  0x40   : > { %2530 = sst [smem:[#allocation22_spill]] %s1790_s5 }
  0x41   : > { %2531 = sst [smem:[#allocation23_spill]] %s1792_s18 }
  0x42   : > { %s1804_s5 = sld [smem:[#allocation4 + $0x3e]] }
  0x43   : > { %s1806_s18 = sld [smem:[#allocation4 + $0x2b]] }
  0x44   : > { %s1820_s4 = sld [smem:[#allocation4 + $0x5e]] }
  0x48   : > { %2536 = sst [smem:[#allocation26_spill]] %s1804_s5 }
  0x49   : > { %2537 = sst [smem:[#allocation27_spill]] %s1806_s18 }
  0x4a   : > { %s1815_s18 = sld [smem:[#allocation4 + $0x5a]] }
  0x4b   : > { %s1817_s5 = sld [smem:[#allocation4 + $0x2d]] }
  0x51   : > { %2540 = sst [smem:[#allocation30_spill]] %s1817_s5 }
  0x52   : > { %s1832_s5 = sld [smem:[#allocation4 + $0x7]] }
  0x92   : > { %v249_v23 = vpop.xlane.xlu0 %248  ;;  %v272_v24 = vpop.xlane.xlu2 %271 }
  0x93   : > { %v255_v26 = vpop.xlane.xlu1 %254  ;;  %v266_v29 = vmul.f32 %v265_v27, %v249_v23  ;;  %v306_v41 = vperm.slane %v272_v24, %v287_v28 }
  0x94   : > { %v268_v35 = vmul.f32 %v265_v27, %v255_v26 }
  0x95   : > { %v288_v38 = vperm.slane %v266_v29, %v287_v28 }
  0x96   : > { %v294_v44 = vperm.slane %v268_v35, %v293_v34 }
  0x9a   : > { %v252_v30 = vpop.xlane.xlu0 %251  ;;  %v275_v36 = vpop.xlane.xlu2 %274 }
  0x9b   : > { %v267_v32 = vmul.f32 %v265_v27, %v252_v30  ;;  %v258_v33 = vpop.xlane.xlu1 %257  ;;  %v307_v42 = vperm.slane %v275_v36, %v289_v31 }
  0x9c   : > { %v269_v40 = vmul.f32 %v265_v27, %v258_v33 }
  0x9d   : > { %v290_v37 = vperm.slane %v267_v32, %v289_v31  ;;  %v308_v50 = vsel %vm291_vm2, %v307_v42, %v306_v41 }
  0x9e   : > { %v298_v45 = vperm.slane %v269_v40, %v297_v39 }
  0x9f   : > { %v292_v43 = vsel %vm291_vm2, %v290_v37, %v288_v38  ;;  %v382_v38 = vadd.s32 24, %v363_v63  ;;  %vm566_vm2 = vcmask 261120  }
  0xa0   : > { %v296_v49 = vsel %vm295_vm3, %v294_v44, %v292_v43 }
  0xa1   : > { %v300_v56 = vsel %vm299_vm4, %v298_v45, %v296_v49 }
  0xa2   : > { %v278_v46 = vpop.xlane.xlu0 %277 }
  0xa3   : > { %v309_v47 = vperm.slane %v278_v46, %v293_v34  ;;  %v281_v48 = vpop.xlane.xlu1 %280 }
  0xa4   : > { %v311_v51 = vperm.slane %v281_v48, %v297_v39 }
  0xa5   : > { %v310_v54 = vsel %vm295_vm3, %v309_v47, %v308_v50  ;;  %v1443_v47 = vld [vmem:[%s2513_s3 + $0x4] ss:$8 sm:$0x3]  ;;  %s1802_s3 = sld [smem:[#allocation4 + $0xd]]  ;;  %vm676_vm3 = vcmask 637952  }
  0xa6   : > { %v312_v55 = vsel %vm299_vm4, %v311_v51, %v310_v54  ;;  %vm785_vm4 = vcmask 646144  }
  0xa7   : > { %v315_v57 = vsel %vm314_vm5, %v300_v56, %v312_v55 }
  0xa8   : > { %v329_v58 = vmul.f32 %v1525_v52, %v315_v57  ;;  %v318_v59 = vmul.f32 %v1526_v53, %v315_v57 }
  0xaa   : > { %v330_v60 = vsel %vm319_vm6, %v329_v58, 0.0  ;;  %v320_v61 = vsel %vm319_vm6, %v318_v59, 0.0  ;;  %vm1113_vm6 = vcmask 670720  }
  0xab   : > { %331 = vadd.xlane.f32.xlu0 %v330_v60  ;;  %321 = vadd.xlane.f32.xlu2 %v320_v61  ;;  %2535 = sst [smem:[#allocation25_spill]] %s1802_s3 }
  0xac   : > { %s1813_s3 = sld [smem:[#allocation4 + $0x29]] }
  0xb2   : > { %2539 = sst [smem:[#allocation29_spill]] %s1813_s3 }
  0xb3   : > { %s1824_s3 = sld [smem:[#allocation4 + $0x1b]] }
  0xb9   : > { %2541 = sst [smem:[#allocation31_spill]] %s1824_s3 }
  0xba   : > { %s1838_s3 = sld [smem:[#allocation4 + $0x38]] }
  0xbf   : > { %893 = vrot.lane.b32.xlu0 %v1428_v1, %s2463_s12  ;;  %s1778_s12 = sld [smem:[#allocation4 + $0x17]] }
  0xc3   : > { %673 = vrot.lane.b32.xlu2 %v1398_v62, %s1571_s9  ;;  %s1739_s9 = sld [smem:[#allocation4 + $0x9]] }
  0xc5   : > { %2525 = sst [smem:[#allocation17_spill]] %s1778_s12 }
  0xcb   : > { %782 = vrot.lane.b32.xlu2 %v1413_v8, %s1573_s21  ;;  %s1764_s21 = sld [smem:[#allocation4 + $0x10]] }
  0xd1   : > { %2519 = sst [smem:[#allocation11_spill]] %s1764_s21 }
 0x11e   : > { %v332_v15 = vpop.xlane.xlu0 %331  ;;  %v322_v16 = vpop.xlane.xlu2 %321 }
 0x11f   : > { %v333_v17 = vmax.f32 %v332_v15, 0.0  ;;  %v323_v18 = vmax.f32 %v322_v16, 0.0 }
 0x121   : > { %v336_v19 = vmul.f32 %v1527_v13, %v333_v17  ;;  %v326_v20 = vmul.f32 %v1528_v14, %v323_v18 }
 0x123   : > { %v337_v21 = vadd.f32 %v336_v19, %v326_v20 }
 0x125   : > { %v339_v22 = vrot.slane %v337_v21, 1 }
 0x126   : > { %v1698_v39 = vpop.permute.xlu2 %673 }
 0x127   : > { %v341_v23 = vadd.f32 %v339_v22, %v337_v21 }
 0x129   : > { %v1370_v24 = vmul.f32 -1.442695, %v341_v23 }
 0x12b   : > { %1531 = vpow2.f32 %v1370_v24 }
 0x12e   : > { %v1700_v40 = vpop.permute.xlu2 %782 }
 0x131   : > { %v1532_v25 = vpop.eup %1531  ;;  %v1715_v44 = vpop.permute.xlu0 %893 }
 0x132   : > { %v345_v26 = vadd.f32 1.0, %v1532_v25 }
 0x134   : > { %1533 = vrcp.f32 %v345_v26  ;;  %v357_v30 = vand.u32 2147483648, %v345_v26  ;;  %v355_v32 = vand.u32 2147483647, %v345_v26  ;;  %vm351_vm8 = vweird.f32 %v345_v26 }
 0x136   : > { %v358_v34 = vor.u32 1.1754944e-38, %v357_v30  ;;  %vm356_vm10 = vcmp.eq.f32.partialorder %v355_v32, 8.507059e+37 }
 0x13a   : > { %v1534_v27 = vpop.eup %1533 }
 0x13b   : > { %v347_v28 = vmul.f32 %v1534_v27, %v345_v26  ;;  %vm352_vm7 = vweird.f32 %v1534_v27 }
 0x13c   : > { %vm353_vm9 = vmor %vm351_vm8, %vm352_vm7  ;;  %vm1222_vm7 = vcmask 678912   ;;  %vm575_vm8 = vcmask 629760  }
 0x13d   : > { %v348_v29 = vsub.f32 1.0, %v347_v28 }
 0x13f   : > { %v349_v31 = vmul.f32 %v1534_v27, %v348_v29 }
 0x141   : > { %v350_v33 = vadd.f32 %v1534_v27, %v349_v31 }
 0x143   : > { %v354_v35 = vsel %vm353_vm9, %v1534_v27, %v350_v33  ;;  %vm684_vm9 = vcmask 1039360  }
 0x144   : > { %v359_v36 = vsel %vm356_vm10, %v358_v34, %v354_v35  ;;  %vm793_vm10 = vcmask 1031168  }
 0x145   : > { %v361_v37 = vperm.slane %v359_v36, 0 }
 0x147   : > { %378 = vperm.xlu0 %1522, %v361_v37   ;;  %372 = vperm.xlu2 %1521, %v361_v37  }
 0x148   : > { %366 = vperm.xlu1 %1520, %v361_v37  }
 0x14f   : > { %1523 = vset.pattern.permute.xlu2 %v382_v38  ;;  %1524 = vset.pattern.permute.xlu0 %v382_v38 }
 0x157   : > { %384 = vperm.xlu2 %1523, %v361_v37  }
 0x15f   : > { %1001 = vrot.lane.b32.xlu2 %v1443_v47, %s1575_s14  ;;  %s1775_s14 = sld [smem:[#allocation4 + $0x3c]]  ;;  %v741_v47 = vstv %s1754_s16 }
 0x160   : > { %s2132_s16 = sld [smem:[#allocation4 + $0x43]] }
 0x165   : > { %2524 = sst [smem:[#allocation16_spill]] %s1775_s14 }
 0x1a1   : > { %v373_v41 = vpop.permute.xlu2 %372 }
 0x1a2   : > { %v388_v42 = vmul.f32 %v373_v41, %v1655_v9  ;;  %v389_v43 = vmul.f32 %v373_v41, %v1657_v10  ;;  %v1574_v10 = vmov 32.0  }
 0x1a3   : > { %1535 = vrcp.f32 %v1574_v10  ;;  %v806_v10 = vstv %s1725_s28  ;;  %s2545_s28 = sld [smem:[#allocation21_spill]] }
 0x1a4   : > { %396 = vst [vmem:[%s1707_s25 + $0x10] sm:$0xff] %v388_v42 }
 0x1a5   : > { %397 = vst [vmem:[%s1707_s25 + $0x18] sm:$0xff] %v389_v43 }
 0x1b1   : > { %v385_v45 = vpop.permute.xlu2 %384 }
 0x1b2   : > { %v392_v46 = vmul.f32 %v385_v45, %v1659_v11  ;;  %v393_v9 = vmul.f32 %v385_v45, %v1661_v12  ;;  %v1741_v11 = vpop.eup %1535  ;;  %v604_v45 = vstv %s1717_s19  ;;  %s1852_s19 = sld [smem:[#allocation4 + $0x59]] }
 0x1b3   : > { %vm425_vm11 = vweird.f32 %v1741_v11 }
 0x1b4   : > { %400 = vst [vmem:[%s1707_s25 + $0x30] sm:$0xff] %v392_v46  ;;  %v430_v53 = vmax.f32 %v388_v42, %v392_v46  ;;  %v439_v54 = vmax.f32 %v389_v43, %v393_v9 }
 0x1b5   : > { %401 = vst [vmem:[%s1707_s25 + $0x38] sm:$0xff] %v393_v9 }
 0x1b8   : > { %2543 = sst [smem:[#allocation33_spill]] %s1852_s19 }
 0x1b9   : > { %v379_v12 = vpop.permute.xlu0 %378 }
 0x1ba   : > { %v390_v48 = vmul.f32 %v379_v12, %v1645_v4  ;;  %v391_v49 = vmul.f32 %v379_v12, %v1651_v7  ;;  %v367_v50 = vpop.permute.xlu1 %366  ;;  %v421_v4 = vmul.f32 32.0, %v1741_v11  ;;  %v699_v12 = vstv %s1746_s13  ;;  %s2125_s13 = sld [smem:[#allocation4 + $0x5c]] }
 0x1bb   : > { %v386_v51 = vmul.f32 %v367_v50, %v1641_v2  ;;  %v387_v52 = vmul.f32 %v367_v50, %v1643_v3  ;;  %v588_v50 = vstv %s1730_s30  ;;  %s2547_s30 = sld [smem:[#allocation22_spill]] }
 0x1bc   : > { %398 = vst [vmem:[%s1707_s25 + $0x20] sm:$0xff] %v390_v48  ;;  %v422_v60 = vsub.f32 1.0, %v421_v4  ;;  %v697_v4 = vstv %s1739_s9  ;;  %s2550_s9 = sld [smem:[#allocation25_spill]] }
 0x1bd   : > { %399 = vst [vmem:[%s1707_s25 + $0x28] sm:$0xff] %v391_v49  ;;  %v402_v7 = vadd.f32 %v388_v42, %v386_v51  ;;  %v411_v55 = vadd.f32 %v389_v43, %v387_v52  ;;  %v429_v56 = vmax.f32 %v386_v51, %v390_v48  ;;  %v438_v57 = vmax.f32 %v387_v52, %v391_v49 }
 0x1be   : > { %394 = vst [vmem:[%s1707_s25] sm:$0xff] %v386_v51  ;;  %v423_v14 = vmul.f32 %v1741_v11, %v422_v60  ;;  %v808_v43 = vstv %s1713_s26  ;;  %v632_v51 = vstv %s1761_s20  ;;  %s1846_s26 = sld [smem:[#allocation4 + $0x28]]  ;;  %v916_v60 = vstv %s1773_s11 }
 0x1bf   : > { %395 = vst [vmem:[%s1707_s25 + $0x8] sm:$0xff] %v387_v52  ;;  %v403_v2 = vadd.f32 %v402_v7, %v390_v48  ;;  %v412_v3 = vadd.f32 %v411_v55, %v391_v49  ;;  %v431_v58 = vmax.f32 %v429_v56, %v430_v53  ;;  %v440_v59 = vmax.f32 %v438_v57, %v439_v54  ;;  %s1794_s25 = sld [smem:[#allocation4 + $0x55]] }
 0x1c0   : > { %v424_v23 = vadd.f32 %v1741_v11, %v423_v14  ;;  %v602_v49 = vstv %s1727_s29  ;;  %v713_v52 = vstv %s1767_s22  ;;  %v820_v53 = vstv %s1733_s6  ;;  %s1866_s29 = sld [smem:[#allocation4 + $0x46]] }
 0x1c1   : > { %v404_v61 = vadd.f32 %v403_v2, %v392_v46  ;;  %v413_v62 = vadd.f32 %v412_v3, %v393_v9  ;;  %v432_v63 = vrot.slane %v431_v58, 4  ;;  %v441_v1 = vrot.slane %v440_v59, 4  ;;  %s2548_s6 = sld [smem:[#allocation23_spill]] }
 0x1c2   : > { %v426_v31 = vsel %vm425_vm11, %v1741_v11, %v424_v23  ;;  %v590_v46 = vstv %s1719_s27  ;;  %v822_v9 = vstv %s1721_s24  ;;  %v618_v11 = vstv %s1737_s8  ;;  %s1858_s27 = sld [smem:[#allocation4 + $0x15]] }
 0x1c3   : > { %v405_v5 = vrot.slane %v404_v61, 4  ;;  %v414_v6 = vrot.slane %v413_v62, 4  ;;  %v433_v8 = vmax.f32 %v431_v58, %v432_v63  ;;  %v442_v13 = vmax.f32 %v440_v59, %v441_v1  ;;  %s1878_s11 = sld [smem:[#allocation4 + $0x4d]] }
 0x1c4   : > { %2542 = sst [smem:[#allocation32_spill]] %s1846_s26  ;;  %v616_v54 = vstv %s1735_s7  ;;  %v739_v7 = vstv %s1750_s15  ;;  %v630_v55 = vstv %s1758_s17  ;;  %v711_v56 = vstv %s1764_s21  ;;  %s2494_s17 = smov 96  }
 0x1c5   : > { %v406_v15 = vadd.f32 %v405_v5, %v404_v61  ;;  %v415_v16 = vadd.f32 %v414_v6, %v413_v62  ;;  %v434_v17 = vrot.slane %v433_v8, 2  ;;  %v443_v18 = vrot.slane %v442_v13, 2  ;;  %2532 = sst [smem:[#allocation24_spill]] %s1794_s25 }
 0x1c6   : > { %s1809_s25 = sld [smem:[#allocation4 + $0x12]]  ;;  %v1025_v57 = vstv %s1769_s23  ;;  %v1027_v2 = vstv %s1771_s10  ;;  %v918_v61 = vstv %s1775_s14  ;;  %v725_v6 = vstv %s1778_s12 }
 0x1c7   : > { %v407_v19 = vrot.slane %v406_v15, 2  ;;  %v416_v20 = vrot.slane %v415_v16, 2  ;;  %v435_v21 = vmax.f32 %v433_v8, %v434_v17  ;;  %v444_v22 = vmax.f32 %v442_v13, %v443_v18  ;;  %2546 = sst [smem:[#allocation21_spill]] %s1866_s29 }
 0x1c8   : > { %2544 = sst [smem:[#allocation34_spill]] %s1858_s27  ;;  %v727_v8 = vstv %s1780_s0  ;;  %v850_v13 = vstv %s1782_s1  ;;  %v852_v14 = vstv %s1784_s2  ;;  %v836_v18 = vstv %s2545_s28  ;;  %s2492_s0 = smov 112  }
 0x1c9   : > { %v408_v24 = vadd.f32 %v407_v19, %v406_v15  ;;  %v417_v25 = vadd.f32 %v416_v20, %v415_v16  ;;  %v436_v26 = vrot.slane %v435_v21, 1  ;;  %v445_v27 = vrot.slane %v444_v22, 1  ;;  %s2549_s7 = sld [smem:[#allocation24_spill]] }
 0x1ca   : > { %s1872_s10 = sld [smem:[#allocation4 + $0x1c]]  ;;  %v838_v19 = vstv %s2547_s30  ;;  %v644_v20 = vstv %s2548_s6  ;;  %s2583_s30 = smov 96   ;;  %vm903_vm11 = vcmask 1022976  }
 0x1cb   : > { %v409_v28 = vrot.slane %v408_v24, 1  ;;  %v418_v29 = vrot.slane %v417_v25, 1  ;;  %v446_v30 = vmax.f32 %v444_v22, %v445_v27  ;;  %v437_v35 = vmax.f32 %v435_v21, %v436_v26  ;;  %s2552_s14 = sld [smem:[#allocation26_spill]] }
 0x1cc   : > { %2538 = sst [smem:[#allocation28_spill]] %s1809_s25  ;;  %v1134_v22 = vstv %s2550_s9  ;;  %v1192_v27 = vstv %s1815_s18 }
 0x1cd   : > { %v410_v33 = vadd.f32 %v409_v28, %v408_v24  ;;  %v419_v34 = vadd.f32 %v418_v29, %v417_v25  ;;  %v465_v36 = vrot.slane %v446_v30, 7  ;;  %s1826_s25 = sld [smem:[#allocation4 + $0x4c]] }
 0x1ce   : > { %2553 = sst [smem:[#allocation24_spill]] %s1878_s11 }
 0x1cf   : > { %v428_v37 = vmul.f32 %v426_v31, %v419_v34  ;;  %v466_v38 = vsel %vm314_vm5, %v437_v35, %v465_v36  ;;  %v427_v0 = vmul.f32 %v426_v31, %v410_v33  ;;  %s2554_s23 = sld [smem:[#allocation27_spill]]  ;;  %v646_v21 = vstv %s2549_s7 }
 0x1d0   : > { %468 = vst.msk [vmem:[#allocation3 + $0x1] sm:$0x3] %vm1798_vm12, %v466_v38  ;;  %2551 = sst [smem:[#allocation22_spill]] %s1872_s10  ;;  %v880_v31 = vstv %s1820_s4  ;;  %v480_v35 = vstv %s1832_s5 }
 0x1d1   : > { %v457_v41 = vrot.slane %v428_v37, 7  ;;  %s2555_s22 = sld [smem:[#allocation28_spill]]  ;;  %v1136_v23 = vstv %s2552_s14 }
 0x1d2   : > { %s2556_s21 = sld [smem:[#allocation29_spill]] }
 0x1d3   : > { %v458_v42 = vsel %vm314_vm5, %v427_v0, %v457_v41  ;;  %s1881_s20 = sld [smem:[#allocation4 + $0x2f]]  ;;  %v1164_v34 = vstv %s1826_s25  ;;  %v482_v0 = vstv %s1838_s3  ;;  %v1081_v41 = vstv %s1846_s26  ;;  %s2569_s26 = smov 80  }
 0x1d4   : > { %462 = vst.msk [vmem:[#allocation2 + $0x1] sm:$0x3] %vm1798_vm12, %v458_v42  ;;  %s2557_s12 = sld [smem:[#allocation30_spill]]  ;;  %vm1004_vm5 = vcmask 662528   ;;  %vm1012_vm12 = vcmask 1014784  }
 0x1d5   : > { %s1887_s2 = sld [smem:[#allocation4 + $0x60]]  ;;  %v658_v24 = vstv %s2554_s23 }
 0x1d6   : > { %s2559_s1 = sld [smem:[#allocation31_spill]] }
 0x1d7   : > { %v1840_v48 = vld [vmem:[#allocation3] sm:$0x7]  ;;  %s1893_s6 = sld [smem:[#allocation4 + $0x2a]]  ;;  %v930_v25 = vstv %s2555_s22 }
 0x1d8   : > { %v809_v58 = vmul.f32 %v808_v43, %v1840_v48  ;;  %v605_v59 = vmul.f32 %v604_v45, %v1840_v48  ;;  %v591_v5 = vmul.f32 %v590_v46, %v1840_v48  ;;  %v1190_v26 = vstv %s2556_s21  ;;  %v1907_v36 = vld [vmem:[#allocation3 + $0x1] sm:$0x7]  ;;  %s1927_s8 = sld [smem:[#allocation4 + $0x30]] }
 0x1d9   : > { %v823_v37 = vmul.f32 %v822_v9, %v1840_v48  ;;  %v619_v38 = vmul.f32 %v618_v11, %v1840_v48  ;;  %v700_v43 = vmul.f32 %v699_v12, %v1840_v48  ;;  %v1083_v45 = vstv %s1852_s19  ;;  %s1931_s14 = sld [smem:[#allocation4 + $0x61]]  ;;  %s1578_s19 = smov 64  }
 0x1da   : > { %v878_v30 = vstv %s2557_s12  ;;  %v510_v46 = vstv %s1858_s27  ;;  %v512_v9 = vstv %s1866_s29  ;;  %v742_v12 = vmul.f32 %v741_v47, %v1907_v36  ;;  %s1938_s29 = sld [smem:[#allocation4 + $0x3]]  ;;  %s2567_s27 = smov 96  }
 0x1db   : > { %v1860_v3 = vld [vmem:[#allocation2] sm:$0x7]  ;;  %2558 = sst [smem:[#allocation29_spill]] %s1887_s2 }
 0x1dc   : > { %v807_v62 = vmul.f32 %v806_v10, %v1860_v3  ;;  %v603_v63 = vmul.f32 %v602_v49, %v1860_v3  ;;  %v589_v1 = vmul.f32 %v588_v50, %v1860_v3  ;;  %v821_v28 = vmul.f32 %v820_v53, %v1860_v3  ;;  %v1919_v42 = vld [vmem:[#allocation2 + $0x1] sm:$0x7]  ;;  %s1967_s15 = sld [smem:[#allocation4 + $0x1]] }
 0x1dd   : > { %v617_v29 = vmul.f32 %v616_v54, %v1860_v3  ;;  %v698_v32 = vmul.f32 %v697_v4, %v1860_v3  ;;  %v1162_v33 = vstv %s2559_s1  ;;  %v527_v49 = vstv %s1872_s10  ;;  %s1981_s22 = sld [smem:[#allocation4 + $0x32]] }
 0x1de   : > { %v810_v15 = vadd.f32 %v809_v58, %v807_v62  ;;  %v606_v16 = vadd.f32 %v605_v59, %v603_v63  ;;  %v592_v17 = vadd.f32 %v591_v5, %v589_v1  ;;  %v824_v10 = vadd.f32 %v823_v37, %v821_v28  ;;  %v832_v62 = vld [vmem:[#allocation2 + $0x1] sm:$0x3]  ;;  %v833_v63 = vld [vmem:[#allocation3 + $0x1] sm:$0x3]  ;;  %s1993_s23 = sld [smem:[#allocation4 + $0x4]] }
 0x1df   : > { %v620_v11 = vadd.f32 %v619_v38, %v617_v29  ;;  %v529_v50 = vstv %s1878_s11  ;;  %v701_v53 = vadd.f32 %v700_v43, %v698_v32  ;;  %v1095_v54 = vstv %s1881_s20  ;;  %s2006_s10 = sld [smem:[#allocation4 + $0xe]] }
 0x1e0   : > { %812 = vrot.lane.b32.xlu0 %v810_v15, %s2492_s0  ;;  %608 = vrot.lane.b32.xlu2 %v606_v16, %s2494_s17  ;;  %v1097_v4 = vstv %s1887_s2  ;;  %2566 = sst [smem:[#allocation30_spill]] %s1938_s29  ;;  %v740_v58 = vmul.f32 %v739_v7, %v1919_v42  ;;  %v631_v47 = vmul.f32 %v630_v55, %v1919_v42  ;;  %v633_v59 = vmul.f32 %v632_v51, %v1907_v36 }
 0x1e1   : > { %594 = vrot.lane.b32.xlu1 %v592_v17, %s2492_s0  ;;  %s1917_s0 = sld [smem:[#allocation4 + $0x5b]]  ;;  %v557_v1 = vstv %s1893_s6  ;;  %v712_v7 = vmul.f32 %v711_v56, %v1860_v3  ;;  %v714_v55 = vmul.f32 %v713_v52, %v1840_v48  ;;  %v1026_v51 = vmul.f32 %v1025_v57, %v1860_v3 }
 0x1e2   : > { %v917_v5 = vmul.f32 %v916_v60, %v1860_v3  ;;  %v1028_v15 = vmul.f32 %v1027_v2, %v1840_v48  ;;  %v919_v16 = vmul.f32 %v918_v61, %v1840_v48  ;;  %v726_v56 = vmul.f32 %v725_v6, %v1860_v3  ;;  %s2001_s2 = sld [smem:[#allocation4 + $0x35]] }
 0x1e3   : > { %v851_v52 = vmul.f32 %v850_v13, %v1919_v42  ;;  %v728_v57 = vmul.f32 %v727_v8, %v1840_v48  ;;  %v853_v60 = vmul.f32 %v852_v14, %v1907_v36  ;;  %v837_v2 = vmul.f32 %v836_v18, %v832_v62  ;;  %s2029_s21 = sld [smem:[#allocation4 + $0x2]] }
 0x1e4   : > { %v839_v61 = vmul.f32 %v838_v19, %v833_v63  ;;  %v743_v6 = vadd.f32 %v742_v12, %v740_v58  ;;  %v634_v17 = vadd.f32 %v633_v59, %v631_v47  ;;  %v1998_v13 = vmul.f32 %v646_v21, %v1907_v36  ;;  %s2040_s1 = sld [smem:[#allocation4 + $0x33]] }
 0x1e5   : > { %v715_v14 = vadd.f32 %v714_v55, %v712_v7  ;;  %v1029_v28 = vadd.f32 %v1028_v15, %v1026_v51  ;;  %v920_v18 = vadd.f32 %v919_v16, %v917_v5  ;;  %v645_v19 = vmul.f32 %v644_v20, %v1919_v42  ;;  %s2054_s25 = sld [smem:[#allocation4 + $0x23]] }
 0x1e6   : > { %v729_v29 = vadd.f32 %v728_v57, %v726_v56  ;;  %v2008_v32 = vadd.f32 %v853_v60, %v851_v52  ;;  %v1191_v21 = vmul.f32 %v1190_v26, %v1919_v42  ;;  %v1193_v37 = vmul.f32 %v1192_v27, %v1907_v36  ;;  %s2067_s3 = sld [smem:[#allocation4 + $0x54]] }
 0x1e7   : > { %v559_v8 = vstv %s1917_s0  ;;  %s2016_s0 = sld [smem:[#allocation4 + $0x3f]]  ;;  %v2018_v38 = vadd.f32 %v839_v61, %v837_v2  ;;  %v879_v20 = vmul.f32 %v878_v30, %v1919_v42  ;;  %v881_v43 = vmul.f32 %v880_v31, %v1907_v36 }
 0x1e8   : > { %826 = vrot.lane.b32.xlu0 %v824_v10, %s2567_s27  ;;  %622 = vrot.lane.b32.xlu2 %v620_v11, %s2569_s26  ;;  %s1952_s27 = sld [smem:[#allocation4 + $0x34]]  ;;  %s2575_s26 = smov 112   ;;  %v1163_v10 = vmul.f32 %v1162_v33, %v1919_v42  ;;  %v2033_v26 = vadd.f32 %v1193_v37, %v1191_v21  ;;  %v1165_v27 = vmul.f32 %v1164_v34, %v1907_v36  ;;  %v1204_v30 = vstv %s1927_s8 }
 0x1e9   : > { %703 = vrot.lane.b32.xlu1 %v701_v53, %s2575_s26  ;;  %v1206_v31 = vstv %s1931_s14  ;;  %v2043_v33 = vadd.f32 %v881_v43, %v879_v20  ;;  %v481_v11 = vmul.f32 %v480_v35, %v1860_v3  ;;  %v483_v53 = vmul.f32 %v482_v0, %v1840_v48  ;;  %s2585_s5 = sld [smem:[#allocation30_spill]]  ;;  %s2586_s8 = smov 80  }
 0x1ea   : > { %v1082_v34 = vmul.f32 %v1081_v41, %v1919_v42  ;;  %v2056_v12 = vadd.f32 %v1165_v27, %v1163_v10  ;;  %v1084_v58 = vmul.f32 %v1083_v45, %v1907_v36  ;;  %v511_v47 = vmul.f32 %v510_v46, %v1860_v3  ;;  %s2080_s14 = sld [smem:[#allocation4 + $0x5]] }
 0x1eb   : > { %v513_v35 = vmul.f32 %v512_v9, %v1840_v48  ;;  %v2069_v0 = vadd.f32 %v483_v53, %v481_v11  ;;  %v528_v41 = vmul.f32 %v527_v49, %v1919_v42  ;;  %v530_v59 = vmul.f32 %v529_v50, %v1907_v36  ;;  %s2092_s9 = sld [smem:[#allocation4 + $0x36]] }
 0x1ec   : > { %v1096_v45 = vmul.f32 %v1095_v54, %v1919_v42  ;;  %v2082_v46 = vadd.f32 %v1084_v58, %v1082_v34  ;;  %v1098_v62 = vmul.f32 %v1097_v4, %v1907_v36  ;;  %v558_v49 = vmul.f32 %v557_v1, %v1919_v42  ;;  %s2099_s20 = sld [smem:[#allocation4 + $0x6]] }
 0x1ed   : > { %v2084_v9 = vadd.f32 %v513_v35, %v511_v47  ;;  %v2094_v63 = vadd.f32 %v530_v59, %v528_v41  ;;  %v560_v50 = vmul.f32 %v559_v8, %v1907_v36  ;;  %v1205_v54 = vmul.f32 %v1204_v30, %v1919_v42  ;;  %s2106_s6 = sld [smem:[#allocation4 + $0x37]] }
 0x1ee   : > { %v1207_v7 = vmul.f32 %v1206_v31, %v1907_v36  ;;  %v2101_v55 = vadd.f32 %v1098_v62, %v1096_v45  ;;  %v801_v51 = vstv %s1952_s27  ;;  %v581_v5 = vstv %s1967_s15  ;;  %s2114_s24 = sld [smem:[#allocation4]] }
 0x1ef   : > { %v799_v4 = vstv %s2585_s5  ;;  %v2108_v1 = vadd.f32 %v560_v50, %v558_v49  ;;  %v802_v16 = vmul.f32 %v801_v51, %v1840_v48  ;;  %v648_v52 = vadd.f32 %v1998_v13, %v645_v19  ;;  %s2122_s27 = sld [smem:[#allocation4 + $0x31]] }
 0x1f0   : > { %745 = vrot.lane.b32.xlu0 %v743_v6, %s1578_s19  ;;  %636 = vrot.lane.b32.xlu2 %v634_v17, %s1578_s19  ;;  %v2110_v15 = vadd.f32 %v1207_v7, %v1205_v54  ;;  %v800_v56 = vmul.f32 %v799_v4, %v1860_v3  ;;  %v583_v57 = vstv %s1981_s22  ;;  %v582_v60 = vmul.f32 %v581_v5, %v1860_v3  ;;  %s2148_s15 = sld [smem:[#allocation4 + $0x26]] }
 0x1f1   : > { %717 = vrot.lane.b32.xlu1 %v715_v14, %s2583_s30  ;;  %v909_v2 = vstv %s1993_s23  ;;  %v584_v6 = vmul.f32 %v583_v57, %v1840_v48  ;;  %v911_v13 = vstv %s2001_s2  ;;  %v495_v14 = vstv %s2006_s10  ;;  %s2155_s17 = sld [smem:[#allocation4 + $0x57]] }
 0x1f2   : > { %v2127_v61 = vadd.f32 %v802_v16, %v800_v56  ;;  %v910_v17 = vmul.f32 %v909_v2, %v1860_v3  ;;  %v912_v8 = vmul.f32 %v911_v13, %v1840_v48  ;;  %v692_v43 = vstv %s2040_s1  ;;  %s2161_s22 = sld [smem:[#allocation4 + $0x19]]  ;;  %s1580_s1 = smov 32  }
 0x1f3   : > { %v2138_v19 = vadd.f32 %v584_v6, %v582_v60  ;;  %v542_v10 = vstv %s2054_s25  ;;  %v544_v27 = vstv %s2067_s3  ;;  %v693_v31 = vmul.f32 %v692_v43, %v1840_v48  ;;  %s2173_s10 = sld [smem:[#allocation4 + $0x25]] }
 0x1f4   : > { %v2143_v20 = vadd.f32 %v912_v8, %v910_v17  ;;  %v543_v11 = vmul.f32 %v542_v10, %v1919_v42  ;;  %v545_v53 = vmul.f32 %v544_v27, %v1907_v36  ;;  %v1018_v34 = vstv %s2080_s14  ;;  %s2181_s18 = sld [smem:[#allocation4 + $0x4a]] }
 0x1f5   : > { %v1020_v58 = vstv %s2092_s9  ;;  %v1127_v47 = vstv %s2099_s20  ;;  %v1129_v35 = vstv %s2106_s6  ;;  %v1019_v45 = vmul.f32 %v1018_v34, %v1860_v3  ;;  %s2194_s28 = sld [smem:[#allocation4 + $0x56]] }
 0x1f6   : > { %v2165_v59 = vadd.f32 %v545_v53, %v543_v11  ;;  %v1021_v62 = vmul.f32 %v1020_v58, %v1840_v48  ;;  %v1128_v49 = vmul.f32 %v1127_v47, %v1860_v3  ;;  %v1130_v50 = vmul.f32 %v1129_v35, %v1840_v48  ;;  %s2208_s29 = sld [smem:[#allocation4 + $0x14]] }
 0x1f7   : > { %v473_v54 = vstv %s2114_s24  ;;  %v475_v7 = vstv %s2122_s27  ;;  %v660_v4 = vstv %s2125_s13  ;;  %v1135_v5 = vmul.f32 %v1134_v22, %v1860_v3  ;;  %s2210_s4 = sld [smem:[#allocation4 + $0x45]] }
 0x1f8   : > { %1031 = vrot.lane.b32.xlu0 %v1029_v28, %s2575_s26  ;;  %922 = vrot.lane.b32.xlu2 %v920_v18, %s2575_s26  ;;  %v497_v28 = vstv %s2016_s0  ;;  %v690_v18 = vstv %s2029_s21  ;;  %s1579_s21 = smov 48   ;;  %v476_v51 = vmul.f32 %v475_v7, %v1840_v48  ;;  %v659_v16 = vmul.f32 %v658_v24, %v1919_v42  ;;  %s2214_s12 = sld [smem:[#allocation4 + $0x20]] }
 0x1f9   : > { %731 = vrot.lane.b32.xlu1 %v729_v29, %s2586_s8  ;;  %v496_v29 = vmul.f32 %v495_v14, %v1860_v3  ;;  %v498_v21 = vmul.f32 %v497_v28, %v1840_v48  ;;  %v691_v37 = vmul.f32 %v690_v18, %v1860_v3  ;;  %v932_v56 = vstv %s2132_s16  ;;  %s2219_s7 = sld [smem:[#allocation4 + $0x13]]  ;;  %s1581_s0 = smov 82  }
 0x1fa   : > { %v931_v57 = vmul.f32 %v930_v25, %v1860_v3  ;;  %v1137_v2 = vmul.f32 %v1136_v23, %v1840_v48  ;;  %v661_v22 = vmul.f32 %v660_v4, %v1907_v36  ;;  %v933_v6 = vmul.f32 %v932_v56, %v1840_v48  ;;  %s2224_s25 = sld [smem:[#allocation4 + $0x51]] }
 0x1fb   : > { %v2150_v30 = vadd.f32 %v498_v21, %v496_v29  ;;  %v2163_v41 = vadd.f32 %v693_v31, %v691_v37  ;;  %v864_v13 = vstv %s2148_s15  ;;  %v944_v8 = vstv %s2161_s22  ;;  %s1449_s3 = sld [smem:[#allocation4 + $0x44]] }
 0x1fc   : > { %v1138_v24 = vadd.f32 %v1137_v2, %v1135_v5  ;;  %v662_v17 = vadd.f32 %v661_v22, %v659_v16  ;;  %v934_v25 = vadd.f32 %v933_v6, %v931_v57  ;;  %v753_v23 = vstv %s2173_s10  ;;  %s2233_s5 = sld [smem:[#allocation4 + $0x27]] }
 0x1fd   : > { %v866_v14 = vstv %s2155_s17  ;;  %v946_v28 = vstv %s2181_s18  ;;  %v865_v18 = vmul.f32 %v864_v13, %v1919_v42  ;;  %v945_v29 = vmul.f32 %v944_v8, %v1919_v42  ;;  %s2235_s14 = sld [smem:[#allocation4 + $0x58]] }
 0x1fe   : > { %v755_v21 = vstv %s2194_s28  ;;  %v754_v37 = vmul.f32 %v753_v23, %v1919_v42  ;;  %v867_v43 = vmul.f32 %v866_v14, %v1907_v36  ;;  %v947_v10 = vmul.f32 %v946_v28, %v1907_v36  ;;  %s2239_s9 = sld [smem:[#allocation4 + $0x21]]  ;;  %s1582_s28 = smov 83  }
 0x1ff   : > { %v756_v27 = vmul.f32 %v755_v21, %v1907_v36  ;;  %v1148_v34 = vstv %s2208_s29  ;;  %v958_v58 = vstv %s2214_s12  ;;  %v1039_v47 = vstv %s2219_s7  ;;  %s2244_s20 = sld [smem:[#allocation4 + $0x2c]]  ;;  %s1586_s29 = smov 124  }
 0x200   : > { %856 = vrot.lane.b32.xlu0 %v2008_v32, %s1578_s19  ;;  %842 = vrot.lane.b32.xlu2 %v2018_v38, %s2586_s8  ;;  %v2183_v32 = vadd.f32 %v1021_v62, %v1019_v45  ;;  %v474_v38 = vmul.f32 %v473_v54, %v1860_v3  ;;  %v868_v31 = vadd.f32 %v867_v43, %v865_v18  ;;  %v1150_v35 = vstv %s2210_s4  ;;  %s2249_s6 = sld [smem:[#allocation4 + $0x52]]  ;;  %s1587_s4 = smov 125  }
 0x201   : > { %650 = vrot.lane.b32.xlu1 %v648_v52, %s1579_s21  ;;  %v2196_v52 = vadd.f32 %v1130_v50, %v1128_v49  ;;  %v948_v11 = vadd.f32 %v947_v10, %v945_v29  ;;  %v757_v53 = vadd.f32 %v756_v27, %v754_v37  ;;  %v960_v45 = vstv %s2224_s25  ;;  %s1412_s24 = sld [smem:[#allocation4 + $0x5d]]  ;;  %s1588_s12 = smov 123  }
 0x202   : > { %v2201_v60 = vadd.f32 %v476_v51, %v474_v38  ;;  %v1149_v62 = vmul.f32 %v1148_v34, %v1860_v3  ;;  %v959_v49 = vmul.f32 %v958_v58, %v1919_v42  ;;  %v1041_v50 = vstv %s1449_s3  ;;  %s2257_s27 = sld [smem:[#allocation4 + $0x22]]  ;;  %s1590_s25 = smov 51  }
 0x203   : > { %v1040_v54 = vmul.f32 %v1039_v47, %v1860_v3  ;;  %v1151_v7 = vmul.f32 %v1150_v35, %v1840_v48  ;;  %v961_v4 = vmul.f32 %v960_v45, %v1907_v36  ;;  %v1042_v38 = vmul.f32 %v1041_v50, %v1840_v48  ;;  %s2259_s13 = sld [smem:[#allocation4 + $0x53]] }
 0x204   : > { %v972_v56 = vstv %s2233_s5  ;;  %v1067_v57 = vstv %s2239_s9  ;;  %s1441_s16 = sld [smem:[#allocation4 + $0x2e]]  ;;  %v974_v48 = vstv %s2235_s14 }
 0x205   : > { %v1152_v51 = vadd.f32 %v1151_v7, %v1149_v62  ;;  %v962_v5 = vadd.f32 %v961_v4, %v959_v49  ;;  %v1043_v16 = vadd.f32 %v1042_v38, %v1040_v54  ;;  %v767_v3 = vstv %s2244_s20  ;;  %s1450_s15 = sld [smem:[#allocation4 + $0x1a]] }
 0x206   : > { %v1069_v2 = vstv %s2249_s6  ;;  %s1442_s17 = sld [smem:[#allocation4 + $0x5f]]  ;;  %v973_v22 = vmul.f32 %v972_v56, %v1919_v42  ;;  %v1068_v6 = vmul.f32 %v1067_v57, %v1919_v42 }
 0x207   : > { %s1451_s22 = sld [smem:[#allocation4 + $0x4b]]  ;;  %v1070_v13 = vmul.f32 %v1069_v2, %v1907_v36 }
 0x208   : > { %1140 = vrot.lane.b32.xlu0 %v1138_v24, %s2575_s26  ;;  %664 = vrot.lane.b32.xlu2 %v662_v17, %s1580_s1  ;;  %v769_v24 = vstv %s1412_s24  ;;  %v768_v17 = vmul.f32 %v767_v3, %v1919_v42  ;;  %v1176_v18 = vstv %s2257_s27  ;;  %s2591_s10 = sld [smem:[#allocation38_spill]] }
 0x209   : > { %936 = vrot.lane.b32.xlu1 %v934_v25, %s2583_s30  ;;  %v975_v25 = vmul.f32 %v974_v48, %v1907_v36  ;;  %v770_v8 = vmul.f32 %v769_v24, %v1907_v36  ;;  %v1071_v14 = vadd.f32 %v1070_v13, %v1068_v6  ;;  %v1178_v37 = vstv %s2259_s13  ;;  %s2592_s7 = sld [smem:[#allocation8_spill]] }
 0x20a   : > { %v986_v29 = vstv %s1441_s16  ;;  %v1177_v10 = vmul.f32 %v1176_v18, %v1919_v42 }
 0x20b   : > { %v976_v23 = vadd.f32 %v975_v25, %v973_v22  ;;  %v771_v28 = vadd.f32 %v770_v8, %v768_v17  ;;  %v1053_v21 = vstv %s1450_s15  ;;  %v987_v27 = vmul.f32 %v986_v29, %v1919_v42 }
 0x20c   : > { %v988_v43 = vstv %s1442_s17 }
 0x20d   : > { %v989_v34 = vmul.f32 %v988_v43, %v1907_v36 }
 0x20e   : > { %v1458_v62 = vld [vmem:[%s2591_s10 + $0x5] ss:$8 sm:$0x3] }
 0x20f   : > { %v990_v35 = vadd.f32 %v989_v34, %v987_v27 }
 0x210   : > { %870 = vrot.lane.b32.xlu0 %v868_v31, %s1579_s21  ;;  %950 = vrot.lane.b32.xlu2 %v948_v11, %s2586_s8  ;;  %v1055_v31 = vstv %s1451_s22  ;;  %v1054_v11 = vmul.f32 %v1053_v21, %v1919_v42  ;;  %v2294_v42 = vpop.permute.xlu2 %1001 }
 0x211   : > { %759 = vrot.lane.b32.xlu1 %v757_v53, %s1579_s21  ;;  %v1179_v53 = vmul.f32 %v1178_v37, %v1907_v36  ;;  %v1056_v58 = vmul.f32 %v1055_v31, %v1907_v36  ;;  %v1473_v36 = vld [vmem:[%s2591_s10 + $0x6] ss:$8 sm:$0x3] }
 0x213   : > { %v1180_v47 = vadd.f32 %v1179_v53, %v1177_v10  ;;  %v1057_v45 = vadd.f32 %v1056_v58, %v1054_v11 }
 0x218   : > { %1154 = vrot.lane.b32.xlu0 %v1152_v51, %s2583_s30  ;;  %964 = vrot.lane.b32.xlu2 %v962_v5, %s1578_s19 }
 0x219   : > { %1045 = vrot.lane.b32.xlu1 %v1043_v16, %s2583_s30 }
 0x220   : > { %978 = vrot.lane.b32.xlu0 %v976_v23, %s1579_s21  ;;  %1073 = vrot.lane.b32.xlu2 %v1071_v14, %s1578_s19 }
 0x221   : > { %773 = vrot.lane.b32.xlu1 %v771_v28, %s1580_s1 }
 0x228   : > { %1182 = vrot.lane.b32.xlu0 %v1180_v47, %s1578_s19  ;;  %992 = vrot.lane.b32.xlu2 %v990_v35, %s1580_s1 }
 0x229   : > { %1059 = vrot.lane.b32.xlu1 %v1057_v45, %s2586_s8 }
 0x230   : > { %1196 = vrot.lane.b32.xlu0 %v2033_v26, %s1579_s21  ;;  %1110 = vrot.lane.b32.xlu2 %v1458_v62, %s1581_s0 }
 0x231   : > { %884 = vrot.lane.b32.xlu1 %v2043_v33, %s1580_s1 }
 0x238   : > { %1219 = vrot.lane.b32.xlu0 %v1473_v36, %s1582_s28  ;;  %486 = vrot.lane.b32.xlu2 %v2069_v0, %s2575_s26 }
 0x239   : > { %1168 = vrot.lane.b32.xlu1 %v2056_v12, %s2586_s8 }
 0x23a   : > { %v609_v26 = vpop.permute.xlu2 %608 }
 0x23b   : > { %v610_v56 = vrot.slane %v609_v26, 1 }
 0x23d   : > { %v611_v22 = vsel %vm504_vm14, %v609_v26, %v610_v56 }
 0x240   : > { %516 = vrot.lane.b32.xlu0 %v2084_v9, %s2586_s8  ;;  %533 = vrot.lane.b32.xlu2 %v2094_v63, %s1578_s19  ;;  %s1584_s8 = smov 127  }
 0x241   : > { %1087 = vrot.lane.b32.xlu1 %v2082_v46, %s1579_s21 }
 0x242   : > { %v623_v33 = vpop.permute.xlu2 %622 }
 0x243   : > { %v624_v6 = vrot.slane %v623_v33, 1 }
 0x245   : > { %v625_v13 = vsel %vm519_vm15, %v623_v33, %v624_v6 }
 0x248   : > { %563 = vrot.lane.b32.xlu0 %v2108_v1, %s1580_s1 }
 0x249   : > { %1101 = vrot.lane.b32.xlu1 %v2101_v55, %s1580_s1 }
 0x24a   : > { %v637_v0 = vpop.permute.xlu2 %636 }
 0x24b   : > { %v638_v8 = vrot.slane %v637_v0, 7 }
 0x24d   : > { %v639_v18 = vsel %vm536_vm0, %v638_v8, %v637_v0 }
 0x251   : > { %1210 = vrot.lane.b32.xlu1 %v2110_v15, %s1580_s1  ;;  %s1589_s1 = smov 122  }
 0x252   : > { %v813_v12 = vpop.permute.xlu0 %812  ;;  %v2317_v9 = vpop.permute.xlu2 %922 }
 0x253   : > { %v814_v49 = vrot.slane %v813_v12, 1  ;;  %v595_v63 = vpop.permute.xlu1 %594  ;;  %v924_v33 = vrot.slane %v2317_v9, 1 }
 0x254   : > { %v596_v38 = vrot.slane %v595_v63, 1 }
 0x255   : > { %v815_v50 = vsel %vm489_vm13, %v813_v12, %v814_v49 }
 0x256   : > { %v817_v46 = vadd.f32 %v815_v50, %v2127_v61  ;;  %v570_v61 = vld [vmem:[%s2591_s10] ss:$8 sm:$0x3]  ;;  %v597_v16 = vsel %vm489_vm13, %v595_v63, %v596_v38  ;;  %v925_v63 = vsel %vm489_vm13, %v2317_v9, %v924_v33 }
 0x257   : > { %v599_v57 = vadd.f32 %v597_v16, %v2138_v19 }
 0x259   : > { %501 = vrot.lane.b32.xlu1 %v2150_v30, %s2583_s30  ;;  %s1583_s30 = smov 77   ;;  %v613_v24 = vadd.f32 %v611_v22, %v599_v57 }
 0x25a   : > { %v827_v1 = vpop.permute.xlu0 %826  ;;  %v2323_v54 = vpop.permute.xlu2 %842  ;;  %572 = vrot.lane.b32.xlu2 %v570_v61, %s1583_s30 }
 0x25b   : > { %v828_v55 = vrot.slane %v827_v1, 1  ;;  %v2325_v7 = vpop.permute.xlu1 %703  ;;  %v627_v19 = vadd.f32 %v625_v13, %v613_v24 }
 0x25d   : > { %v829_v15 = vsel %vm504_vm14, %v827_v1, %v828_v55  ;;  %v641_v37 = vadd.f32 %v639_v18, %v627_v19  ;;  %v927_v55 = vadd.f32 %v925_v63, %v2143_v20 }
 0x25e   : > { %v2328_v4 = vadd.f32 %v829_v15, %v817_v46 }
 0x261   : > { %548 = vrot.lane.b32.xlu1 %v2165_v59, %s1579_s21  ;;  %s1585_s21 = smov 126  }
 0x262   : > { %v2335_v30 = vpop.permute.xlu0 %745  ;;  %v665_v51 = vpop.permute.xlu2 %664 }
 0x263   : > { %v718_v5 = vpop.permute.xlu1 %717  ;;  %v666_v29 = vrot.slane %v665_v51, 7 }
 0x264   : > { %v719_v12 = vrot.slane %v718_v5, 1 }
 0x265   : > { %v667_v27 = vsel %vm566_vm2, %v666_v29, %v665_v51  ;;  %v784_v29 = vrot.slane %v1700_v40, 7 }
 0x26a   : > { %v1032_v3 = vpop.permute.xlu0 %1031  ;;  %v2339_v48 = vpop.permute.xlu2 %950 }
 0x26b   : > { %v1033_v59 = vrot.slane %v1032_v3, 1  ;;  %v732_v2 = vpop.permute.xlu1 %731  ;;  %v952_v9 = vrot.slane %v2339_v48, 7 }
 0x26c   : > { %v733_v46 = vrot.slane %v732_v2, 1 }
 0x26d   : > { %v1034_v17 = vsel %vm489_vm13, %v1032_v3, %v1033_v59  ;;  %v953_v20 = vsel %vm519_vm15, %v952_v9, %v2339_v48 }
 0x26e   : > { %v2344_v25 = vadd.f32 %v1034_v17, %v2183_v32  ;;  %v675_v32 = vrot.slane %v1698_v39, 7  ;;  %v734_v51 = vsel %vm519_vm15, %v732_v2, %v733_v46 }
 0x270   : > { %v677_v11 = vsel %vm676_vm3, %v675_v32, %v1698_v39  ;;  %v705_v39 = vrot.slane %v2325_v7, 1  ;;  %vm1271_vm3 = vcmask 416768  }
 0x272   : > { %v2347_v23 = vpop.permute.xlu0 %856  ;;  %v965_v14 = vpop.permute.xlu2 %964  ;;  %v706_v50 = vsel %vm489_vm13, %v2325_v7, %v705_v39  ;;  %v844_v39 = vrot.slane %v2323_v54, 7 }
 0x273   : > { %v651_v28 = vpop.permute.xlu1 %650  ;;  %v708_v15 = vadd.f32 %v706_v50, %v2163_v41  ;;  %v966_v41 = vrot.slane %v965_v14, 7  ;;  %v895_v50 = vrot.slane %v1715_v44, 7 }
 0x274   : > { %v652_v21 = vrot.slane %v651_v28, 7 }
 0x275   : > { %v967_v13 = vsel %vm536_vm0, %v966_v41, %v965_v14 }
 0x276   : > { %v653_v43 = vsel %vm551_vm1, %v652_v21, %v651_v28 }
 0x277   : > { %v655_v10 = vadd.f32 %v653_v43, %v641_v37  ;;  %v1003_v37 = vrot.slane %v2294_v42, 7 }
 0x279   : > { %v669_v31 = vadd.f32 %v667_v27, %v655_v10 }
 0x27a   : > { %v1141_v53 = vpop.permute.xlu0 %1140  ;;  %v2354_v34 = vpop.permute.xlu2 %1073 }
 0x27b   : > { %v1142_v58 = vrot.slane %v1141_v53, 1  ;;  %v937_v47 = vpop.permute.xlu1 %936  ;;  %v679_v35 = vmul.f32 %v677_v11, %v669_v31 }
 0x27c   : > { %v938_v49 = vrot.slane %v937_v47, 1 }
 0x27d   : > { %v1143_v45 = vsel %vm489_vm13, %v1141_v53, %v1142_v58  ;;  %681 = vrot.lane.b32.xlu1 %v679_v35, %s1584_s8  ;;  %v786_v53 = vsel %vm785_vm4, %v784_v29, %v1700_v40 }
 0x27e   : > { %v2358_v62 = vadd.f32 %v1143_v45, %v2196_v52  ;;  %v720_v52 = vsel %vm504_vm14, %v718_v5, %v719_v12  ;;  %v939_v1 = vsel %vm504_vm14, %v937_v47, %v938_v49  ;;  %v747_v5 = vrot.slane %v2335_v30, 7 }
 0x27f   : > { %v722_v7 = vadd.f32 %v720_v52, %v708_v15  ;;  %v941_v56 = vadd.f32 %v939_v1, %v927_v55  ;;  %v1005_v47 = vsel %vm1004_vm5, %v1003_v37, %v2294_v42 }
 0x280   : > { %v748_v22 = vsel %vm536_vm0, %v747_v5, %v2335_v30 }
 0x281   : > { %v736_v57 = vadd.f32 %v734_v51, %v722_v7  ;;  %v955_v59 = vadd.f32 %v953_v20, %v941_v56 }
 0x282   : > { %v2360_v36 = vpop.permute.xlu0 %870  ;;  %v993_v26 = vpop.permute.xlu2 %992 }
 0x283   : > { %v760_v0 = vpop.permute.xlu1 %759  ;;  %v750_v6 = vadd.f32 %v748_v22, %v736_v57  ;;  %v994_v8 = vrot.slane %v993_v26, 7  ;;  %v969_v48 = vadd.f32 %v967_v13, %v955_v59 }
 0x284   : > { %v761_v3 = vrot.slane %v760_v0, 7 }
 0x285   : > { %v995_v31 = vsel %vm566_vm2, %v994_v8, %v993_v26  ;;  %v845_v26 = vsel %vm519_vm15, %v844_v39, %v2323_v54  ;;  %v896_v54 = vsel %vm519_vm15, %v895_v50, %v1715_v44  ;;  %v1075_v44 = vrot.slane %v2354_v34, 7 }
 0x286   : > { %v762_v2 = vsel %vm551_vm1, %v761_v3, %v760_v0  ;;  %v858_v0 = vrot.slane %v2347_v23, 7  ;;  %v847_v42 = vadd.f32 %v845_v26, %v2328_v4 }
 0x287   : > { %v764_v32 = vadd.f32 %v762_v2, %v750_v6  ;;  %v1076_v6 = vsel %vm536_vm0, %v1075_v44, %v2354_v34 }
 0x288   : > { %v859_v40 = vsel %vm536_vm0, %v858_v0, %v2347_v23 }
 0x289   : > { %v861_v49 = vadd.f32 %v859_v40, %v847_v42 }
 0x28a   : > { %v2372_v61 = vpop.permute.xlu0 %1154  ;;  %v2374_v38 = vpop.permute.xlu2 %1110 }
 0x28b   : > { %v2378_v16 = vpop.permute.xlu1 %1045  ;;  %v1156_v56 = vrot.slane %v2372_v61, 1  ;;  %v1112_v13 = vrot.slane %v2374_v38, 7 }
 0x28c   : > { %v1047_v23 = vrot.slane %v2378_v16, 1 }
 0x28d   : > { %v1157_v22 = vsel %vm504_vm14, %v2372_v61, %v1156_v56  ;;  %v1114_v34 = vsel %vm1113_vm6, %v1112_v13, %v2374_v38 }
 0x28e   : > { %v1048_v9 = vsel %vm504_vm14, %v2378_v16, %v1047_v23 }
 0x28f   : > { %v1050_v57 = vadd.f32 %v1048_v9, %v2344_v25 }
 0x292   : > { %v979_v24 = vpop.permute.xlu0 %978  ;;  %v487_v17 = vpop.permute.xlu2 %486 }
 0x293   : > { %v980_v19 = vrot.slane %v979_v24, 7  ;;  %v774_v28 = vpop.permute.xlu1 %773  ;;  %v488_v18 = vrot.slane %v487_v17, 1 }
 0x294   : > { %v775_v21 = vrot.slane %v774_v28, 7 }
 0x295   : > { %v981_v30 = vsel %vm551_vm1, %v980_v19, %v979_v24  ;;  %v490_v43 = vsel %vm489_vm13, %v487_v17, %v488_v18  ;;  %v1159_v24 = vadd.f32 %v1157_v22, %v2358_v62  ;;  %vm1121_vm13 = vcmask 1006592  }
 0x296   : > { %v983_v10 = vadd.f32 %v981_v30, %v969_v48  ;;  %v776_v14 = vsel %vm566_vm2, %v775_v21, %v774_v28  ;;  %v2393_v27 = vadd.f32 %v490_v43, %v2201_v60  ;;  %v872_v60 = vrot.slane %v2360_v36, 7 }
 0x297   : > { %v778_v11 = vadd.f32 %v776_v14, %v764_v32 }
 0x298   : > { %v997_v58 = vadd.f32 %v995_v31, %v983_v10  ;;  %v873_v12 = vsel %vm551_vm1, %v872_v60, %v2360_v36 }
 0x299   : > { %v788_v35 = vmul.f32 %v786_v53, %v778_v11  ;;  %v875_v52 = vadd.f32 %v873_v12, %v861_v49 }
 0x29a   : > { %v1007_v45 = vmul.f32 %v1005_v47, %v997_v58  ;;  %v1183_v4 = vpop.permute.xlu0 %1182  ;;  %v534_v0 = vpop.permute.xlu2 %533 }
 0x29b   : > { %v1060_v33 = vpop.permute.xlu1 %1059  ;;  %790 = vrot.lane.b32.xlu0 %v788_v35, %s1585_s21  ;;  %v1184_v8 = vrot.slane %v1183_v4, 7  ;;  %v535_v40 = vrot.slane %v534_v0, 7 }
 0x29c   : > { %1009 = vrot.lane.b32.xlu1 %v1007_v45, %s1586_s29  ;;  %v1061_v36 = vrot.slane %v1060_v33, 7 }
 0x29d   : > { %v1185_v48 = vsel %vm536_vm0, %v1184_v8, %v1183_v4  ;;  %v537_v50 = vsel %vm536_vm0, %v535_v40, %v534_v0 }
 0x29e   : > { %v1062_v5 = vsel %vm519_vm15, %v1061_v36, %v1060_v33 }
 0x29f   : > { %v1064_v41 = vadd.f32 %v1062_v5, %v1050_v57 }
 0x2a1   : > { %v1078_v17 = vadd.f32 %v1076_v6, %v1064_v41 }
 0x2a2   : > { %v1197_v59 = vpop.permute.xlu0 %1196 }
 0x2a3   : > { %v885_v63 = vpop.permute.xlu1 %884  ;;  %v1198_v21 = vrot.slane %v1197_v59, 7 }
 0x2a4   : > { %v886_v46 = vrot.slane %v885_v63, 7 }
 0x2a5   : > { %v1199_v10 = vsel %vm551_vm1, %v1198_v21, %v1197_v59 }
 0x2a6   : > { %v887_v1 = vsel %vm566_vm2, %v886_v46, %v885_v63 }
 0x2a7   : > { %v889_v55 = vadd.f32 %v887_v1, %v875_v52 }
 0x2a9   : > { %v898_v15 = vmul.f32 %v896_v54, %v889_v55 }
 0x2aa   : > { %v1220_v37 = vpop.permute.xlu0 %1219 }
 0x2ab   : > { %v1169_v51 = vpop.permute.xlu1 %1168  ;;  %900 = vrot.lane.b32.xlu2 %v898_v15, %s1587_s4  ;;  %v1221_v30 = vrot.slane %v1220_v37, 7 }
 0x2ac   : > { %v1170_v3 = vrot.slane %v1169_v51, 7 }
 0x2ad   : > { %v1223_v11 = vsel %vm1222_vm7, %v1221_v30, %v1220_v37 }
 0x2ae   : > { %v1171_v16 = vsel %vm519_vm15, %v1170_v3, %v1169_v51 }
 0x2af   : > { %v1173_v28 = vadd.f32 %v1171_v16, %v1159_v24 }
 0x2b1   : > { %v1187_v32 = vadd.f32 %v1185_v48, %v1173_v28 }
 0x2b2   : > { %v517_v45 = vpop.permute.xlu0 %516 }
 0x2b3   : > { %v1088_v7 = vpop.permute.xlu1 %1087  ;;  %v1201_v31 = vadd.f32 %v1199_v10, %v1187_v32  ;;  %v518_v39 = vrot.slane %v517_v45, 1 }
 0x2b4   : > { %v1089_v20 = vrot.slane %v1088_v7, 7  ;;  %v573_v1 = vpop.permute.xlu2 %572 }
 0x2b5   : > { %v520_v42 = vsel %vm519_vm15, %v517_v45, %v518_v39  ;;  %v574_v51 = vrot.slane %v573_v1, 7  ;;  %v1254_v45 = vld [vmem:[%s2592_s7 + $0x8] sm:$0xff] }
 0x2b6   : > { %v1090_v2 = vsel %vm551_vm1, %v1089_v20, %v1088_v7  ;;  %v1258_v39 = vld [vmem:[%s2592_s7 + $0x28] sm:$0xff] }
 0x2b7   : > { %v1092_v18 = vadd.f32 %v1090_v2, %v1078_v17  ;;  %v576_v9 = vsel %vm575_vm8, %v574_v51, %v573_v1  ;;  %v1257_v1 = vld [vmem:[%s2592_s7 + $0x20] sm:$0xff] }
 0x2ba   : > { %v564_v49 = vpop.permute.xlu0 %563 }
 0x2bb   : > { %v1102_v25 = vpop.permute.xlu1 %1101  ;;  %v565_v55 = vrot.slane %v564_v49, 7 }
 0x2bc   : > { %v1103_v19 = vrot.slane %v1102_v25, 7 }
 0x2be   : > { %v1104_v61 = vsel %vm566_vm2, %v1103_v19, %v1102_v25 }
 0x2bf   : > { %v1106_v29 = vadd.f32 %v1104_v61, %v1092_v18 }
 0x2c1   : > { %v1116_v62 = vmul.f32 %v1114_v34, %v1106_v29 }
 0x2c3   : > { %v1211_v43 = vpop.permute.xlu1 %1210  ;;  %1118 = vrot.lane.b32.xlu0 %v1116_v62, %s1588_s12 }
 0x2c4   : > { %v1212_v14 = vrot.slane %v1211_v43, 7 }
 0x2c6   : > { %v1213_v53 = vsel %vm566_vm2, %v1212_v14, %v1211_v43 }
 0x2c7   : > { %v1215_v58 = vadd.f32 %v1213_v53, %v1201_v31 }
 0x2c9   : > { %v1225_v38 = vmul.f32 %v1223_v11, %v1215_v58 }
 0x2cb   : > { %1227 = vrot.lane.b32.xlu2 %v1225_v38, %s1589_s1  ;;  %v502_v47 = vpop.permute.xlu1 %501 }
 0x2cc   : > { %v503_v35 = vrot.slane %v502_v47, 1 }
 0x2ce   : > { %v505_v33 = vsel %vm504_vm14, %v502_v47, %v503_v35  ;;  %vm1230_vm14 = vcmask 998400  }
 0x2cf   : > { %v507_v60 = vadd.f32 %v505_v33, %v2393_v27  ;;  %v567_v27 = vsel %vm566_vm2, %v565_v55, %v564_v49  ;;  %v1256_v33 = vld [vmem:[%s2592_s7 + $0x18] sm:$0xff] }
 0x2d1   : > { %v522_v63 = vadd.f32 %v520_v42, %v507_v60 }
 0x2d3   : > { %v549_v26 = vpop.permute.xlu1 %548  ;;  %v539_v52 = vadd.f32 %v537_v50, %v522_v63  ;;  %v1253_v63 = vld [vmem:[%s2592_s7] sm:$0xff] }
 0x2d4   : > { %v550_v12 = vrot.slane %v549_v26, 7 }
 0x2d6   : > { %v552_v46 = vsel %vm551_vm1, %v550_v12, %v549_v26  ;;  %v1260_v26 = vld [vmem:[%s2592_s7 + $0x38] sm:$0xff] }
 0x2d7   : > { %v554_v54 = vadd.f32 %v552_v46, %v539_v52  ;;  %v1255_v46 = vld [vmem:[%s2592_s7 + $0x10] sm:$0xff] }
 0x2d9   : > { %v569_v36 = vadd.f32 %v567_v27, %v554_v54  ;;  %v1259_v54 = vld [vmem:[%s2592_s7 + $0x30] sm:$0xff] }
 0x2db   : > { %v578_v5 = vmul.f32 %v576_v9, %v569_v36 }
 0x2ef   : > { %v682_v15 = vpop.permute.xlu1 %681 }
 0x2f0   : > { %v683_v23 = vrot.slane %v682_v15, 1 }
 0x2f2   : > { %v685_v56 = vsel %vm684_vm9, %v682_v15, %v683_v23 }
 0x2f3   : > { %v687_v3 = vadd.f32 %v685_v56, %v578_v5 }
 0x305   : > { %v901_v57 = vpop.permute.xlu2 %900 }
 0x306   : > { %v902_v20 = vrot.slane %v901_v57, 1 }
 0x308   : > { %v904_v22 = vsel %vm903_vm11, %v901_v57, %v902_v20 }
 0x30d   : > { %v791_v4 = vpop.permute.xlu0 %790 }
 0x30e   : > { %v792_v7 = vrot.slane %v791_v4, 1  ;;  %v1010_v59 = vpop.permute.xlu1 %1009 }
 0x30f   : > { %v1011_v6 = vrot.slane %v1010_v59, 1 }
 0x310   : > { %v794_v44 = vsel %vm793_vm10, %v791_v4, %v792_v7 }
 0x311   : > { %v796_v41 = vadd.f32 %v794_v44, %v687_v3  ;;  %v1013_v17 = vsel %vm1012_vm12, %v1010_v59, %v1011_v6 }
 0x313   : > { %v906_v16 = vadd.f32 %v904_v22, %v796_v41 }
 0x315   : > { %v1015_v8 = vadd.f32 %v1013_v17, %v906_v16 }
 0x325   : > { %v1228_v2 = vpop.permute.xlu2 %1227 }
 0x326   : > { %v1229_v25 = vrot.slane %v1228_v2, 1 }
 0x328   : > { %v1231_v18 = vsel %vm1230_vm14, %v1228_v2, %v1229_v25 }
 0x335   : > { %v1119_v24 = vpop.permute.xlu0 %1118 }
 0x336   : > { %v1120_v13 = vrot.slane %v1119_v24, 1 }
 0x338   : > { %v1122_v19 = vsel %vm1121_vm13, %v1119_v24, %v1120_v13 }
 0x339   : > { %v1124_v28 = vadd.f32 %v1122_v19, %v1015_v8 }
 0x33b   : > { %v1233_v61 = vadd.f32 %v1231_v18, %v1124_v28 }
 0x33d   : > { %v1474_v29 = vmul.f32 -1.442695, %v1233_v61 }
 0x33f   : > { %1537 = vpow2.f32 %v1474_v29 }
 0x345   : > { %v1538_v34 = vpop.eup %1537 }
 0x346   : > { %v1237_v48 = vadd.f32 1.0, %v1538_v34 }
 0x348   : > { %1539 = vrcp.f32 %v1237_v48  ;;  %v1249_v62 = vand.u32 2147483648, %v1237_v48  ;;  %v1247_v43 = vand.u32 2147483647, %v1237_v48  ;;  %vm1243_vm0 = vweird.f32 %v1237_v48 }
 0x34a   : > { %v1250_v14 = vor.u32 1.1754944e-38, %v1249_v62  ;;  %vm1248_vm2 = vcmp.eq.f32.partialorder %v1247_v43, 8.507059e+37 }
 0x34e   : > { %v1540_v21 = vpop.eup %1539 }
 0x34f   : > { %v1239_v37 = vmul.f32 %v1540_v21, %v1237_v48  ;;  %vm1244_vm15 = vweird.f32 %v1540_v21 }
 0x350   : > { %vm1245_vm1 = vmor %vm1243_vm0, %vm1244_vm15 }
 0x351   : > { %v1240_v32 = vsub.f32 1.0, %v1239_v37 }
 0x353   : > { %v1241_v30 = vmul.f32 %v1540_v21, %v1240_v32 }
 0x355   : > { %v1242_v10 = vadd.f32 %v1540_v21, %v1241_v30 }
 0x357   : > { %v1246_v31 = vsel %vm1245_vm1, %v1540_v21, %v1242_v10 }
 0x358   : > { %v1251_v11 = vsel %vm1248_vm2, %v1250_v14, %v1246_v31 }
 0x359   : > { %v1264_v53 = vperm.slane %v1251_v11, 2  ;;  %v1263_v58 = vperm.slane %v1251_v11, 1  ;;  %v1262_v38 = vperm.slane %v1251_v11, 0 }
 0x35b   : > { %1269 = vrot.lane.b32.xlu2 %v1264_v53, %s1590_s25  ;;  %1267 = vrot.lane.b32.xlu0 %v1263_v58, %s1590_s25 }
 0x35c   : > { %1265 = vrot.lane.b32.xlu1 %v1262_v38, %s1590_s25 }
 0x3b5   : > { %v1270_v47 = vpop.permute.xlu2 %1269 }
 0x3cd   : > { %v1268_v35 = vpop.permute.xlu0 %1267 }
 0x3ce   : > { %v1273_v0 = vsel %vm1271_vm3, %v1268_v35, %v1270_v47  ;;  %v1266_v60 = vpop.permute.xlu1 %1265 }
 0x3cf   : > { %v1277_v40 = vmul.f32 %v1273_v0, %v1254_v45  ;;  %v1279_v42 = vmul.f32 %v1273_v0, %v1256_v33  ;;  %v1281_v12 = vmul.f32 %v1273_v0, %v1258_v39  ;;  %v1283_v49 = vmul.f32 %v1273_v0, %v1260_v26 }
 0x3d0   : > { %v1272_v50 = vsel %vm1271_vm3, %v1266_v60, %v1268_v35 }
 0x3d1   : > { %1285 = vst [vmem:[%s2592_s7 + $0x8] sm:$0xff] %v1277_v40  ;;  %v1276_v52 = vmul.f32 %v1272_v50, %v1253_v63  ;;  %v1278_v55 = vmul.f32 %v1272_v50, %v1255_v46  ;;  %v1280_v15 = vmul.f32 %v1272_v50, %v1257_v1  ;;  %v1282_v51 = vmul.f32 %v1272_v50, %v1259_v54 }
 0x3d2   : > { %1287 = vst [vmem:[%s2592_s7 + $0x18] sm:$0xff] %v1279_v42 }
 0x3d3   : > { %1289 = vst [vmem:[%s2592_s7 + $0x28] sm:$0xff] %v1281_v12 }
 0x3d4   : > { %1291 = vst [vmem:[%s2592_s7 + $0x38] sm:$0xff] %v1283_v49 }
 0x3d5   : > { %1284 = vst [vmem:[%s2592_s7] sm:$0xff] %v1276_v52 }
 0x3d6   : > { %1286 = vst [vmem:[%s2592_s7 + $0x10] sm:$0xff] %v1278_v55 }
 0x3d7   : > { %1288 = vst [vmem:[%s2592_s7 + $0x20] sm:$0xff] %v1280_v15 }
 0x3d8   : > { %1290 = vst [vmem:[%s2592_s7 + $0x30] sm:$0xff] %v1282_v51 }
 0x3d9 PF: > { %s2593_s3 = sld [smem:[#allocation7_spill]] }
 0x3df   : > { %s16_s18 = sadd.s32 1, %s2593_s3  }
 0x3e0   : > { %p13_p7 = scmp.ge.s32.totalorder %s16_s18, 4  }
 0x3e2   :  { %15 = sbr.rel (!%p13_p7) target bundleno = 8 (0x8), region = 81 }
 0x3e7   :  { %1313 = vsyncpa [#allocation5], 1 }
 0x3e8   :  { %1315 = vsyncpa [#allocation5 + $0x1], 1 }

</bundles_post_ra>
